<compile_context>
chip_gen: v7x
topology: tpu7x:2x2x1
jax: 0.10.0
libtpu: 0.0.40
codegen_flags: <defaults>
</compile_context>

<pallas_src>
import functools

import jax
import jax.numpy as jnp
from jax.experimental import pallas as pl
from jax.experimental.pallas import tpu as pltpu

BN_EPS = 1e-5
VMEM_LIMIT = 48 * 1024 * 1024          # scoped VMEM request: fits every generation
ENERGY_TILE_BUDGET = 4 * 1024 * 1024   # target bytes for the (ns, TP, M) f32 energy tile


def _round_up(x, m):
    return ((x + m - 1) // m) * m


# ---------------------------------------------------------------------------
# Kernel 1: shared MLP (Conv1d 1x1 + folded BN + ReLU) x 2 over row tiles of
# the flattened (B*N, Cin) activations.  Input pre-cast to bf16 host-side.
# ---------------------------------------------------------------------------
def mlp_kernel(x_ref, w1_ref, b1_ref, w2_ref, b2_ref, o_ref):
    h = jnp.dot(x_ref[...], w1_ref[...], preferred_element_type=jnp.float32) + b1_ref[...]
    h = jnp.maximum(h, 0.0)
    y = jnp.dot(h.astype(jnp.bfloat16), w2_ref[...],
                preferred_element_type=jnp.float32) + b2_ref[...]
    o_ref[...] = jnp.maximum(y, 0.0).astype(o_ref.dtype)


def mlp_pallas(x2d, w1, b1, w2, b2, tm):
    R, Cin = x2d.shape
    C2 = w2.shape[1]

    def const_spec(a):
        return pl.BlockSpec(a.shape, lambda i, n=a.ndim: (0,) * n)

    return pl.pallas_call(
        mlp_kernel,
        out_shape=jax.ShapeDtypeStruct((R, C2), jnp.bfloat16),
        grid=(R // tm,),
        in_specs=[pl.BlockSpec((tm, Cin), lambda i: (i, 0))]
                 + [const_spec(a) for a in (w1, b1, w2, b2)],
        out_specs=pl.BlockSpec((tm, C2), lambda i: (i, 0)),
        compiler_params=pltpu.CompilerParams(
            dimension_semantics=("parallel",), vmem_limit_bytes=VMEM_LIMIT),
    )(x2d, w1, b1, w2, b2)


# ---------------------------------------------------------------------------
# Kernel 2: PCT offset-attention layer + max-pool over nsample + out_aggregation
#   feat (ns, M, Cmlp) bf16, rel (ns, M, 3) bf16  [per batch element]
#   grid = (B, M // TP): query-axis tiles; keys / accumulators live in scratch.
#   out  (out_ch, M) f32, written once per batch element at the last tile.
# ---------------------------------------------------------------------------
def pct_kernel(feat_ref, rel_ref, wk_f_ref, wk_p_ref, wqv_f_ref, wqv_p_ref,
               wf_ref, bf_ref, wa_ref, ba_ref, o_ref,
               k_sc, accv_sc, accs_sc, *, tp, e_dim):
    ns, M, C = feat_ref.shape
    pt = pl.program_id(1)
    n_pt = pl.num_programs(1)

    # ---- once per batch element: keys over the full key axis + zeroed accums ----
    @pl.when(pt == 0)
    def _():
        feat2 = feat_ref[...].reshape(ns * M, C)
        rel2 = rel_ref[...].reshape(ns * M, 3)
        k = (jnp.dot(feat2, wk_f_ref[...], preferred_element_type=jnp.float32)
             + jnp.dot(rel2, wk_p_ref[...], preferred_element_type=jnp.float32))
        k_sc[...] = k.reshape(ns, M, e_dim).astype(jnp.bfloat16)
        accv_sc[...] = jnp.zeros_like(accv_sc)
        accs_sc[...] = jnp.zeros_like(accs_sc)

    # ---- per query tile: fused Q/V projection, energy, softmax(keys), accumulate ----
    p0 = pl.multiple_of(pt * tp, tp)
    feat_t = feat_ref[:, pl.ds(p0, tp), :]                       # (ns, TP, C) bf16
    rel_t = rel_ref[:, pl.ds(p0, tp), :]                         # (ns, TP, 3) bf16
    qv = (jnp.dot(feat_t.reshape(ns * tp, C), wqv_f_ref[...],
                  preferred_element_type=jnp.float32)
          + jnp.dot(rel_t.reshape(ns * tp, 3), wqv_p_ref[...],
                    preferred_element_type=jnp.float32))         # (ns*TP, E + C)
    q3 = qv[:, :e_dim].reshape(ns, tp, e_dim).astype(jnp.bfloat16)
    v3 = qv[:, e_dim:].reshape(ns, tp, C).astype(jnp.bfloat16)

    # energy[n, p, r] = q_p . k_r   (batched over the nsample axis)
    energy = jnp.einsum("npe,nre->npr", q3, k_sc[...],
                        preferred_element_type=jnp.float32)      # (ns, TP, M)
    att = jnp.exp(energy - jnp.max(energy, axis=-1, keepdims=True))
    att = att * pl.reciprocal(jnp.sum(att, axis=-1, keepdims=True), approx=True)

    # offset-attention: x_r[m] = sum_p v_p * att[p, m], divided later by the
    # query-axis sum (PCT's second normalization over a different axis).
    accv_sc[...] += jnp.einsum("npm,npc->nmc", att.astype(jnp.bfloat16), v3,
                               preferred_element_type=jnp.float32)
    accs_sc[...] += jnp.sum(att, axis=1)                         # (ns, M)

    # ---- finalize: renorm, LBR + residual, max-pool over nsample, out_aggregation ----
    @pl.when(pt == n_pt - 1)
    def _():
        feat32 = feat_ref[...].astype(jnp.float32)               # (ns, M, C)
        xr = accv_sc[...] / (1e-9 + accs_sc[...][:, :, None])    # PCT 2nd normalization
        offset = feat32 - xr                                     # PCT: x - x_r
        z = jnp.dot(offset.reshape(ns * M, C).astype(jnp.bfloat16), wf_ref[...],
                    preferred_element_type=jnp.float32) + bf_ref[...]
        result = jnp.maximum(z, 0.0).reshape(ns, M, C) + feat32  # residual
        pooled = jnp.max(result, axis=0)                         # (M, C)
        agg = jnp.dot(pooled.astype(jnp.bfloat16), wa_ref[...],
                      preferred_element_type=jnp.float32) + ba_ref[...]
        o_ref[...] = jnp.maximum(agg, 0.0).T                     # (O, M)


def _choose_tp(ns, M):
    """Query-tile size: largest multiple-of-8 divisor of M whose (ns, TP, M) f32
    energy tile fits ENERGY_TILE_BUDGET (falls back to TP=M for tiny/odd M)."""
    # TODO(synk): for M not divisible by 8 / by any good TP, add query-axis
    # masking instead of falling back to a single full-M tile.
    if M <= 8 or M % 8:
        return M
    tp = max(8, (ENERGY_TILE_BUDGET // (ns * M * 4)) // 8 * 8)
    tp = min(tp, M)
    while tp > 8 and M % tp:
        tp -= 8
    return tp if M % tp == 0 else M


def pct_pallas(feat, rel, fp):
    B, ns, M, C = feat.shape
    E = fp["wk_f"].shape[1]
    O = fp["wa"].shape[1]
    tp = _choose_tp(ns, M)
    weights = [fp["wk_f"], fp["wk_p"], fp["wqv_f"], fp["wqv_p"],
               fp["wf"], fp["bf"], fp["wa"], fp["ba"]]

    def const_spec(a):
        return pl.BlockSpec(a.shape, lambda b, p, n=a.ndim: (0,) * n)

    kernel = functools.partial(pct_kernel, tp=tp, e_dim=E)
    return pl.pallas_call(
        kernel,
        out_shape=jax.ShapeDtypeStruct((B, O, M), jnp.float32),
        grid=(B, M // tp),
        in_specs=[pl.BlockSpec((None, ns, M, C), lambda b, p: (b, 0, 0, 0)),
                  pl.BlockSpec((None, ns, M, 3), lambda b, p: (b, 0, 0, 0))]
                 + [const_spec(w) for w in weights],
        out_specs=pl.BlockSpec((None, O, M), lambda b, p: (b, 0, 0)),
        scratch_shapes=[pltpu.VMEM((ns, M, E), jnp.bfloat16),   # keys (full key axis)
                        pltpu.VMEM((ns, M, C), jnp.float32),    # sum_p att*v accumulator
                        pltpu.VMEM((ns, M), jnp.float32)],      # sum_p att accumulator
        compiler_params=pltpu.CompilerParams(
            dimension_semantics=("parallel", "arbitrary"),
            vmem_limit_bytes=VMEM_LIMIT),
    )(feat, rel, *weights)


# ---------------------------------------------------------------------------
# Plain-JAX glue: ball query (sort-free) + grouping (data-dependent gather).
# ---------------------------------------------------------------------------
def ball_query(radius, nsample, xyz, new_xyz):
    """xyz (B,N,3), new_xyz (B,M,3) -> idx (B,M,nsample) int32 (pointnet2 semantics)."""
    B, N, _ = xyz.shape
    M = new_xyz.shape[1]
    d2 = jnp.sum((new_xyz[:, :, None, :] - xyz[:, None, :, :]) ** 2, axis=-1)  # (B,M,N)
    mask = d2 < radius * radius

    def select(mask_row):                                    # (N,) bool
        rank = jnp.cumsum(mask_row) - 1
        dest = jnp.where(mask_row & (rank < nsample), rank, nsample)
        slots = jnp.full((nsample + 1,), -1, jnp.int32)
        slots = slots.at[dest].set(jnp.arange(N, dtype=jnp.int32))
        idx = slots[:nsample]
        first = jnp.maximum(idx[0], 0)                       # pad with first valid idx
        return jnp.where(idx >= 0, idx, first)

    # TODO(synk): empty balls pad with index 0 (point possibly outside radius).
    idx = jax.vmap(select)(mask.reshape(B * M, N))
    return idx.reshape(B, M, nsample).astype(jnp.int32)


# pts (N, C), idx (ns, M) -> (ns, M, C): grouped tensors come out already in
# (B, ns, M, C) layout; only the small int32 index array gets transposed.
_gather = jax.vmap(lambda pts, idx: pts[idx])


def attentive_sa_forward(fp, xyz, features, ctr_xyz, *, radius, nsample):
    """
    xyz: (B, N, 3), features: (B, C, N), ctr_xyz: (B, M, 3)   (PyTorch conventions)
    returns: new_xyz (B, M, 3), new_features (B, out_ch, M)
    """
    B, N, _ = xyz.shape
    feats_nl = jnp.transpose(features, (0, 2, 1))                   # (B, N, C)
    feat_in = jnp.concatenate([xyz, feats_nl], axis=-1).astype(jnp.bfloat16)  # bf16 DMA

    # --- shared MLP over flattened rows --------------------------------------
    cin = feat_in.shape[-1]
    rows = B * N
    tm = 1024 if rows >= 1024 else _round_up(rows, 8)
    padded = _round_up(rows, tm)
    x2d = feat_in.reshape(rows, cin)
    if padded != rows:
        x2d = jnp.pad(x2d, ((0, padded - rows), (0, 0)))
    new2d = mlp_pallas(x2d, fp["w1"], fp["b1"], fp["w2"], fp["b2"], tm)
    c_mlp = new2d.shape[-1]
    new_feat = new2d[:rows].reshape(B, N, c_mlp)                    # (B, N, Cmlp) bf16

    # --- grouping (idx transposed so gathers emit (B, ns, M, C) directly) -----
    idx = jnp.transpose(ball_query(radius, nsample, xyz, ctr_xyz), (0, 2, 1))       # (B, ns, M)
    idx2 = jnp.transpose(ball_query(radius, nsample, ctr_xyz, ctr_xyz), (0, 2, 1))  # (B, ns, M)
    gfeat = _gather(new_feat, idx)                                  # (B, ns, M, Cmlp) bf16
    gxyz = _gather(xyz, idx)                                        # (B, ns, M, 3)
    gctr = _gather(ctr_xyz, idx2)                                   # (B, ns, M, 3)
    rel = (gctr - gxyz).astype(jnp.bfloat16)                        # (B, ns, M, 3) bf16

    new_features = pct_pallas(gfeat, rel, fp)                       # (B, out_ch, M) f32
    return ctr_xyz, new_features


# ---------------------------------------------------------------------------
# Parameters: raw (torch-equivalent) params + host-side fusion.
# ---------------------------------------------------------------------------
def make_params(key, c_in, mlp_hidden, c_mlp, inter_ch, out_ch):
    ks = jax.random.split(key, 32)
    i = iter(range(32))
    n = lambda shp, s=0.2: s * jax.random.normal(ks[next(i)], shp, jnp.float32)
    pos = lambda shp: 0.5 + jax.random.uniform(ks[next(i)], shp, jnp.float32)
    c_ip = c_mlp + 3
    return {
        # shared MLP (weights stored as (Cin, Cout) == torch_weight.T)
        "w1": n((c_in + 3, mlp_hidden)), "g1": pos((1, mlp_hidden)), "b1": n((1, mlp_hidden)),
        "m1": n((1, mlp_hidden)), "v1": pos((1, mlp_hidden)),
        "w2": n((mlp_hidden, c_mlp)), "g2": pos((1, c_mlp)), "b2": n((1, c_mlp)),
        "m2": n((1, c_mlp)), "v2": pos((1, c_mlp)),
        # PCT layer
        "wq": n((c_ip, inter_ch)), "wk": n((c_ip, inter_ch)), "wv": n((c_ip, c_mlp)),
        "wf": n((c_mlp, c_mlp)),
        "gf": pos((1, c_mlp)), "bf": n((1, c_mlp)), "mf": n((1, c_mlp)), "vf": pos((1, c_mlp)),
        # out_aggregation
        "wa": n((c_mlp, out_ch)),
        "ga": pos((1, out_ch)), "ba": n((1, out_ch)), "ma": n((1, out_ch)), "va": pos((1, out_ch)),
    }


def prepare_params(p):
    """Fold eval-mode BN into the preceding matmul weights (bf16) + one f32 bias;
    split wq/wk/wv rows into (feature, rel_xyz) halves; fuse [wq|wv] so Q and V
    share one matmul per query tile (K stays separate: computed once per batch)."""
    # TODO(synk): BatchNorm uses eval-mode running statistics; training-mode batch
    # stats are not reproduced.
    def fold(w, g, b, m, v):
        s = g * jax.lax.rsqrt(v + BN_EPS)                    # (1, C)
        return (w * s).astype(jnp.bfloat16), (b - m * s).astype(jnp.float32)

    w1, b1 = fold(p["w1"], p["g1"], p["b1"], p["m1"], p["v1"])
    w2, b2 = fold(p["w2"], p["g2"], p["b2"], p["m2"], p["v2"])
    wf, bf = fold(p["wf"], p["gf"], p["bf"], p["mf"], p["vf"])
    wa, ba = fold(p["wa"], p["ga"], p["ba"], p["ma"], p["va"])

    c_mlp = p["wf"].shape[0]

    def split(w):                                            # rows: [features | rel_xyz]
        wb = w.astype(jnp.bfloat16)
        return wb[:c_mlp], wb[c_mlp:]

    wq_f, wq_p = split(p["wq"])
    wk_f, wk_p = split(p["wk"])
    wv_f, wv_p = split(p["wv"])
    wqv_f = jnp.concatenate([wq_f, wv_f], axis=1)            # (C, E + C)
    wqv_p = jnp.concatenate([wq_p, wv_p], axis=1)            # (3, E + C)

    return dict(w1=w1, b1=b1, w2=w2, b2=b2,
                wk_f=wk_f, wk_p=wk_p, wqv_f=wqv_f, wqv_p=wqv_p,
                wf=wf, bf=bf, wa=wa, ba=ba)


if __name__ == "__main__":
    # Module config: npoint=8, radius=0.75, nsample=8, mlp [4+3,16,32] (use_xyz),
    # PCT inter_ch=8, out_channel=32.
    B, N, M = 2, 16, 8
    C_IN, MLP_HIDDEN, C_MLP, INTER_CH, OUT_CH = 4, 16, 32, 8, 32
    RADIUS, NSAMPLE = 0.75, 8

    key = jax.random.PRNGKey(0)
    k_xyz, k_feat, k_param = jax.random.split(key, 3)

    xyz = jax.random.uniform(k_xyz, (B, N, 3), jnp.float32)          # (B, N, 3)
    features = jax.random.normal(k_feat, (B, C_IN, N), jnp.float32)  # (B, C, N)
    ctr_xyz = xyz[:, :M, :]                                          # (B, M, 3) sampled centers

    raw_params = make_params(k_param, C_IN, MLP_HIDDEN, C_MLP, INTER_CH, OUT_CH)
    fused_params = prepare_params(raw_params)

    fwd = jax.jit(functools.partial(attentive_sa_forward, radius=RADIUS, nsample=NSAMPLE))
    new_xyz, new_features = fwd(fused_params, xyz, features, ctr_xyz)
    new_features = jax.block_until_ready(new_features)

    assert new_xyz.shape == (B, M, 3)
    assert new_features.shape == (B, OUT_CH, M)
    assert bool(jnp.all(jnp.isfinite(new_features)))
    print("KERNEL_OK")
</pallas_src>

<mosaic_0001>
module attributes {stable_mosaic.version = 11 : i64} {
  func.func @mlp_kernel(%arg0: i32, %arg1: memref<32x7xbf16, #tpu.memory_space<vmem>>, %arg2: memref<7x16xbf16, #tpu.memory_space<vmem>>, %arg3: memref<1x16xf32, #tpu.memory_space<vmem>>, %arg4: memref<16x32xbf16, #tpu.memory_space<vmem>>, %arg5: memref<1x32xf32, #tpu.memory_space<vmem>>, %arg6: memref<32x32xbf16, #tpu.memory_space<vmem>>) attributes {dimension_semantics = [#tpu.dimension_semantics<parallel>], iteration_bounds = array<i64: 1>, scalar_prefetch = 0 : i64, scratch_operands = 0 : i64, tpu.core_type = #tpu.core_type<tc>, window_params = [{transform_indices = @transform_0, window_bounds = array<i64: 32, 7>}, {pipeline_mode = #tpu.pipeline_mode<synchronous>, transform_indices = @transform_1, window_bounds = array<i64: 7, 16>}, {pipeline_mode = #tpu.pipeline_mode<synchronous>, transform_indices = @transform_2, window_bounds = array<i64: 1, 16>}, {pipeline_mode = #tpu.pipeline_mode<synchronous>, transform_indices = @transform_3, window_bounds = array<i64: 16, 32>}, {pipeline_mode = #tpu.pipeline_mode<synchronous>, transform_indices = @transform_4, window_bounds = array<i64: 1, 32>}, {transform_indices = @transform_5, window_bounds = array<i64: 32, 32>}]} {
    %c0 = arith.constant 0 : index
    %c0_0 = arith.constant 0 : index
    %0 = vector.load %arg1[%c0, %c0_0] : memref<32x7xbf16, #tpu.memory_space<vmem>>, vector<32x7xbf16>
    %c0_1 = arith.constant 0 : index
    %c0_2 = arith.constant 0 : index
    %1 = vector.load %arg2[%c0_1, %c0_2] : memref<7x16xbf16, #tpu.memory_space<vmem>>, vector<7x16xbf16>
    %cst = arith.constant dense<0.000000e+00> : vector<32x16xf32>
    %2 = tpu.matmul %0, %1, %cst {dimension_numbers = #tpu.dot_dimension_numbers<[1], [0], [0], [1], [0, 0, 1, 1], [], []>} : vector<32x7xbf16>, vector<7x16xbf16>, vector<32x16xf32> -> vector<32x16xf32>
    %c0_3 = arith.constant 0 : index
    %c0_4 = arith.constant 0 : index
    %3 = vector.load %arg3[%c0_3, %c0_4] : memref<1x16xf32, #tpu.memory_space<vmem>>, vector<1x16xf32>
    %4 = vector.broadcast %3 : vector<1x16xf32> to vector<32x16xf32>
    %5 = arith.addf %2, %4 : vector<32x16xf32>
    %cst_5 = arith.constant 0.000000e+00 : f32
    %6 = vector.broadcast %cst_5 : f32 to vector<32x16xf32>
    %7 = arith.maximumf %5, %6 : vector<32x16xf32>
    %8 = arith.truncf %7 : vector<32x16xf32> to vector<32x16xbf16>
    %c0_6 = arith.constant 0 : index
    %c0_7 = arith.constant 0 : index
    %9 = vector.load %arg4[%c0_6, %c0_7] : memref<16x32xbf16, #tpu.memory_space<vmem>>, vector<16x32xbf16>
    %cst_8 = arith.constant dense<0.000000e+00> : vector<32x32xf32>
    %10 = tpu.matmul %8, %9, %cst_8 {dimension_numbers = #tpu.dot_dimension_numbers<[1], [0], [0], [1], [0, 0, 1, 1], [], []>} : vector<32x16xbf16>, vector<16x32xbf16>, vector<32x32xf32> -> vector<32x32xf32>
    %c0_9 = arith.constant 0 : index
    %c0_10 = arith.constant 0 : index
    %11 = vector.load %arg5[%c0_9, %c0_10] : memref<1x32xf32, #tpu.memory_space<vmem>>, vector<1x32xf32>
    %12 = vector.broadcast %11 : vector<1x32xf32> to vector<32x32xf32>
    %13 = arith.addf %10, %12 : vector<32x32xf32>
    %cst_11 = arith.constant 0.000000e+00 : f32
    %14 = vector.broadcast %cst_11 : f32 to vector<32x32xf32>
    %15 = arith.maximumf %13, %14 : vector<32x32xf32>
    %16 = arith.truncf %15 : vector<32x32xf32> to vector<32x32xbf16>
    %c0_12 = arith.constant 0 : index
    %c0_13 = arith.constant 0 : index
    %17 = vector.load %arg6[%c0_12, %c0_13] : memref<32x32xbf16, #tpu.memory_space<vmem>>, vector<32x32xbf16>
    tpu.vector_store %arg6[%c0_12, %c0_13], %16 {strides = array<i32>} : memref<32x32xbf16, #tpu.memory_space<vmem>>, vector<32x32xbf16>,
    return
  }
  func.func @transform_0(%arg0: i32) -> (i32, i32) {
    %c0_i32 = arith.constant 0 : i32
    %c0_i32_0 = arith.constant 0 : i32
    return %arg0, %c0_i32 : i32, i32
  }
  func.func @transform_1(%arg0: i32) -> (i32, i32) {
    %c0_i32 = arith.constant 0 : i32
    %c0_i32_0 = arith.constant 0 : i32
    %c0_i32_1 = arith.constant 0 : i32
    return %c0_i32, %c0_i32_0 : i32, i32
  }
  func.func @transform_2(%arg0: i32) -> (i32, i32) {
    %c0_i32 = arith.constant 0 : i32
    %c0_i32_0 = arith.constant 0 : i32
    %c0_i32_1 = arith.constant 0 : i32
    return %c0_i32, %c0_i32_0 : i32, i32
  }
  func.func @transform_3(%arg0: i32) -> (i32, i32) {
    %c0_i32 = arith.constant 0 : i32
    %c0_i32_0 = arith.constant 0 : i32
    %c0_i32_1 = arith.constant 0 : i32
    return %c0_i32, %c0_i32_0 : i32, i32
  }
  func.func @transform_4(%arg0: i32) -> (i32, i32) {
    %c0_i32 = arith.constant 0 : i32
    %c0_i32_0 = arith.constant 0 : i32
    %c0_i32_1 = arith.constant 0 : i32
    return %c0_i32, %c0_i32_0 : i32, i32
  }
  func.func @transform_5(%arg0: i32) -> (i32, i32) {
    %c0_i32 = arith.constant 0 : i32
    %c0_i32_0 = arith.constant 0 : i32
    return %arg0, %c0_i32 : i32, i32
  }
}

module attributes {stable_mosaic.version = 11 : i64} {
  func.func @pct_kernel(%arg0: i32, %arg1: i32, %arg2: memref<1x8x8x32xbf16, #tpu.memory_space<vmem>>, %arg3: memref<1x8x8x3xbf16, #tpu.memory_space<vmem>>, %arg4: memref<32x8xbf16, #tpu.memory_space<vmem>>, %arg5: memref<3x8xbf16, #tpu.memory_space<vmem>>, %arg6: memref<32x40xbf16, #tpu.memory_space<vmem>>, %arg7: memref<3x40xbf16, #tpu.memory_space<vmem>>, %arg8: memref<32x32xbf16, #tpu.memory_space<vmem>>, %arg9: memref<1x32xf32, #tpu.memory_space<vmem>>, %arg10: memref<32x32xbf16, #tpu.memory_space<vmem>>, %arg11: memref<1x32xf32, #tpu.memory_space<vmem>>, %arg12: memref<1x32x8xf32, #tpu.memory_space<vmem>>, %arg13: memref<8x8x8xbf16, #tpu.memory_space<vmem>>, %arg14: memref<8x8x32xf32, #tpu.memory_space<vmem>>, %arg15: memref<8x8xf32, #tpu.memory_space<vmem>>) attributes {dimension_semantics = [#tpu.dimension_semantics<parallel>, #tpu.dimension_semantics<arbitrary>], iteration_bounds = array<i64: 2, 1>, scalar_prefetch = 0 : i64, scratch_operands = 3 : i64, tpu.core_type = #tpu.core_type<tc>, window_params = [{transform_indices = @transform_0, window_bounds = array<i64: 1, 8, 8, 32>}, {transform_indices = @transform_1, window_bounds = array<i64: 1, 8, 8, 3>}, {pipeline_mode = #tpu.pipeline_mode<synchronous>, transform_indices = @transform_2, window_bounds = array<i64: 32, 8>}, {pipeline_mode = #tpu.pipeline_mode<synchronous>, transform_indices = @transform_3, window_bounds = array<i64: 3, 8>}, {pipeline_mode = #tpu.pipeline_mode<synchronous>, transform_indices = @transform_4, window_bounds = array<i64: 32, 40>}, {pipeline_mode = #tpu.pipeline_mode<synchronous>, transform_indices = @transform_5, window_bounds = array<i64: 3, 40>}, {pipeline_mode = #tpu.pipeline_mode<synchronous>, transform_indices = @transform_6, window_bounds = array<i64: 32, 32>}, {pipeline_mode = #tpu.pipeline_mode<synchronous>, transform_indices = @transform_7, window_bounds = array<i64: 1, 32>}, {pipeline_mode = #tpu.pipeline_mode<synchronous>, transform_indices = @transform_8, window_bounds = array<i64: 32, 32>}, {pipeline_mode = #tpu.pipeline_mode<synchronous>, transform_indices = @transform_9, window_bounds = array<i64: 1, 32>}, {transform_indices = @transform_10, window_bounds = array<i64: 1, 32, 8>}]} {
    %c0_i32 = arith.constant 0 : i32
    %0 = arith.cmpi eq, %arg1, %c0_i32 : i32
    %1 = arith.extui %0 : i1 to i32
    %c0_i32_0 = arith.constant 0 : i32
    %2 = arith.cmpi ne, %1, %c0_i32_0 : i32
    scf.if %2 {
      %c0_31 = arith.constant 0 : index
      %c0_32 = arith.constant 0 : index
      %c0_33 = arith.constant 0 : index
      %c0_34 = arith.constant 0 : index
      %48 = vector.load %arg2[%c0_31, %c0_32, %c0_33, %c0_34] : memref<1x8x8x32xbf16, #tpu.memory_space<vmem>>, vector<1x8x8x32xbf16>
      %49 = vector.shape_cast %48 : vector<1x8x8x32xbf16> to vector<8x8x32xbf16>
      %50 = vector.shape_cast %49 : vector<8x8x32xbf16> to vector<64x32xbf16>
      %c0_35 = arith.constant 0 : index
      %c0_36 = arith.constant 0 : index
      %c0_37 = arith.constant 0 : index
      %c0_38 = arith.constant 0 : index
      %51 = vector.load %arg3[%c0_35, %c0_36, %c0_37, %c0_38] : memref<1x8x8x3xbf16, #tpu.memory_space<vmem>>, vector<1x8x8x3xbf16>
      %52 = vector.shape_cast %51 : vector<1x8x8x3xbf16> to vector<8x8x3xbf16>
      %53 = vector.shape_cast %52 : vector<8x8x3xbf16> to vector<64x3xbf16>
      %c0_39 = arith.constant 0 : index
      %c0_40 = arith.constant 0 : index
      %54 = vector.load %arg4[%c0_39, %c0_40] : memref<32x8xbf16, #tpu.memory_space<vmem>>, vector<32x8xbf16>
      %cst_41 = arith.constant dense<0.000000e+00> : vector<64x8xf32>
      %55 = tpu.matmul %50, %54, %cst_41 {dimension_numbers = #tpu.dot_dimension_numbers<[1], [0], [0], [1], [0, 0, 1, 1], [], []>} : vector<64x32xbf16>, vector<32x8xbf16>, vector<64x8xf32> -> vector<64x8xf32>
      %c0_42 = arith.constant 0 : index
      %c0_43 = arith.constant 0 : index
      %56 = vector.load %arg5[%c0_42, %c0_43] : memref<3x8xbf16, #tpu.memory_space<vmem>>, vector<3x8xbf16>
      %cst_44 = arith.constant dense<0.000000e+00> : vector<64x8xf32>
      %57 = tpu.matmul %53, %56, %cst_44 {dimension_numbers = #tpu.dot_dimension_numbers<[1], [0], [0], [1], [0, 0, 1, 1], [], []>} : vector<64x3xbf16>, vector<3x8xbf16>, vector<64x8xf32> -> vector<64x8xf32>
      %58 = arith.addf %55, %57 : vector<64x8xf32>
      %59 = vector.shape_cast %58 : vector<64x8xf32> to vector<8x8x8xf32>
      %60 = arith.truncf %59 : vector<8x8x8xf32> to vector<8x8x8xbf16>
      %c0_45 = arith.constant 0 : index
      %c0_46 = arith.constant 0 : index
      %c0_47 = arith.constant 0 : index
      %61 = vector.load %arg13[%c0_45, %c0_46, %c0_47] : memref<8x8x8xbf16, #tpu.memory_space<vmem>>, vector<8x8x8xbf16>
      tpu.vector_store %arg13[%c0_45, %c0_46, %c0_47], %60 {strides = array<i32>} : memref<8x8x8xbf16, #tpu.memory_space<vmem>>, vector<8x8x8xbf16>,
      %cst_48 = arith.constant 0.000000e+00 : f32
      %62 = vector.broadcast %cst_48 : f32 to vector<8x8x32xf32>
      %c0_49 = arith.constant 0 : index
      %c0_50 = arith.constant 0 : index
      %c0_51 = arith.constant 0 : index
      %63 = vector.load %arg14[%c0_49, %c0_50, %c0_51] : memref<8x8x32xf32, #tpu.memory_space<vmem>>, vector<8x8x32xf32>
      tpu.vector_store %arg14[%c0_49, %c0_50, %c0_51], %62 {strides = array<i32>} : memref<8x8x32xf32, #tpu.memory_space<vmem>>, vector<8x8x32xf32>,
      %cst_52 = arith.constant 0.000000e+00 : f32
      %64 = vector.broadcast %cst_52 : f32 to vector<8x8xf32>
      %c0_53 = arith.constant 0 : index
      %c0_54 = arith.constant 0 : index
      %65 = vector.load %arg15[%c0_53, %c0_54] : memref<8x8xf32, #tpu.memory_space<vmem>>, vector<8x8xf32>
      tpu.vector_store %arg15[%c0_53, %c0_54], %64 {strides = array<i32>} : memref<8x8xf32, #tpu.memory_space<vmem>>, vector<8x8xf32>,
    } else {
    }
    %c8_i32 = arith.constant 8 : i32
    %3 = arith.muli %arg1, %c8_i32 : i32
    %4 = tpu.assume_multiple %3, 8 : i32
    %c0 = arith.constant 0 : index
    %c0_1 = arith.constant 0 : index
    %5 = arith.index_cast %4 : i32 to index
    %c0_2 = arith.constant 0 : index
    %6 = vector.load %arg2[%c0, %c0_1, %5, %c0_2] : memref<1x8x8x32xbf16, #tpu.memory_space<vmem>>, vector<1x8x8x32xbf16>
    %7 = vector.shape_cast %6 : vector<1x8x8x32xbf16> to vector<8x8x32xbf16>
    %c0_3 = arith.constant 0 : index
    %c0_4 = arith.constant 0 : index
    %8 = arith.index_cast %4 : i32 to index
    %c0_5 = arith.constant 0 : index
    %9 = vector.load %arg3[%c0_3, %c0_4, %8, %c0_5] : memref<1x8x8x3xbf16, #tpu.memory_space<vmem>>, vector<1x8x8x3xbf16>
    %10 = vector.shape_cast %9 : vector<1x8x8x3xbf16> to vector<8x8x3xbf16>
    %11 = vector.shape_cast %7 : vector<8x8x32xbf16> to vector<64x32xbf16>
    %c0_6 = arith.constant 0 : index
    %c0_7 = arith.constant 0 : index
    %12 = vector.load %arg6[%c0_6, %c0_7] : memref<32x40xbf16, #tpu.memory_space<vmem>>, vector<32x40xbf16>
    %cst = arith.constant dense<0.000000e+00> : vector<64x40xf32>
    %13 = tpu.matmul %11, %12, %cst {dimension_numbers = #tpu.dot_dimension_numbers<[1], [0], [0], [1], [0, 0, 1, 1], [], []>} : vector<64x32xbf16>, vector<32x40xbf16>, vector<64x40xf32> -> vector<64x40xf32>
    %14 = vector.shape_cast %10 : vector<8x8x3xbf16> to vector<64x3xbf16>
    %c0_8 = arith.constant 0 : index
    %c0_9 = arith.constant 0 : index
    %15 = vector.load %arg7[%c0_8, %c0_9] : memref<3x40xbf16, #tpu.memory_space<vmem>>, vector<3x40xbf16>
    %cst_10 = arith.constant dense<0.000000e+00> : vector<64x40xf32>
    %16 = tpu.matmul %14, %15, %cst_10 {dimension_numbers = #tpu.dot_dimension_numbers<[1], [0], [0], [1], [0, 0, 1, 1], [], []>} : vector<64x3xbf16>, vector<3x40xbf16>, vector<64x40xf32> -> vector<64x40xf32>
    %17 = arith.addf %13, %16 : vector<64x40xf32>
    %18 = vector.extract_strided_slice %17 {offsets = [0, 0], sizes = [64, 8], strides = [1, 1]} : vector<64x40xf32> to vector<64x8xf32>
    %19 = vector.shape_cast %18 : vector<64x8xf32> to vector<8x8x8xf32>
    %20 = arith.truncf %19 : vector<8x8x8xf32> to vector<8x8x8xbf16>
    %21 = vector.extract_strided_slice %17 {offsets = [0, 8], sizes = [64, 32], strides = [1, 1]} : vector<64x40xf32> to vector<64x32xf32>
    %22 = vector.shape_cast %21 : vector<64x32xf32> to vector<8x8x32xf32>
    %23 = arith.truncf %22 : vector<8x8x32xf32> to vector<8x8x32xbf16>
    %c0_11 = arith.constant 0 : index
    %c0_12 = arith.constant 0 : index
    %c0_13 = arith.constant 0 : index
    %24 = vector.load %arg13[%c0_11, %c0_12, %c0_13] : memref<8x8x8xbf16, #tpu.memory_space<vmem>>, vector<8x8x8xbf16>
    "tpu.trace_start"() <{level = 10 : i32, message = "npe,nre->npr"}> : () -> ()
    %cst_14 = arith.constant dense<0.000000e+00> : vector<8x8x8xf32>
    %25 = tpu.matmul %20, %24, %cst_14 {dimension_numbers = #tpu.dot_dimension_numbers<[2], [2], [1], [1], [0, 0, 0, 1, 1, 1], [0], [0]>} : vector<8x8x8xbf16>, vector<8x8x8xbf16>, vector<8x8x8xf32> -> vector<8x8x8xf32>
    "tpu.trace_stop"() : () -> ()
    %cst_15 = arith.constant dense<0xFF800000> : vector<8x8xf32>
    %26 = vector.multi_reduction <maximumf>, %25, %cst_15 [2] : vector<8x8x8xf32> to vector<8x8xf32>
    %27 = vector.shape_cast %26 : vector<8x8xf32> to vector<8x8x1xf32>
    %28 = vector.broadcast %27 : vector<8x8x1xf32> to vector<8x8x8xf32>
    %29 = arith.subf %25, %28 : vector<8x8x8xf32>
    %30 = math.exp %29 : vector<8x8x8xf32>
    %cst_16 = arith.constant dense<0.000000e+00> : vector<8x8xf32>
    %31 = vector.multi_reduction <add>, %30, %cst_16 [2] : vector<8x8x8xf32> to vector<8x8xf32>
    %32 = vector.shape_cast %31 : vector<8x8xf32> to vector<8x8x1xf32>
    %33 = tpu.reciprocal %32 {approx = true} : vector<8x8x1xf32> -> vector<8x8x1xf32>
    %34 = vector.broadcast %33 : vector<8x8x1xf32> to vector<8x8x8xf32>
    %35 = arith.mulf %30, %34 : vector<8x8x8xf32>
    %c0_17 = arith.constant 0 : index
    %c0_18 = arith.constant 0 : index
    %c0_19 = arith.constant 0 : index
    %36 = vector.load %arg14[%c0_17, %c0_18, %c0_19] : memref<8x8x32xf32, #tpu.memory_space<vmem>>, vector<8x8x32xf32>
    %37 = arith.truncf %35 : vector<8x8x8xf32> to vector<8x8x8xbf16>
    "tpu.trace_start"() <{level = 10 : i32, message = "npm,npc->nmc"}> : () -> ()
    %cst_20 = arith.constant dense<0.000000e+00> : vector<8x8x32xf32>
    %38 = tpu.matmul %37, %23, %cst_20 {dimension_numbers = #tpu.dot_dimension_numbers<[1], [1], [2], [2], [0, 0, 0, 2, 1, 2], [0], [0]>} : vector<8x8x8xbf16>, vector<8x8x32xbf16>, vector<8x8x32xf32> -> vector<8x8x32xf32>
    "tpu.trace_stop"() : () -> ()
    %39 = arith.addf %36, %38 : vector<8x8x32xf32>
    %c0_21 = arith.constant 0 : index
    %c0_22 = arith.constant 0 : index
    %c0_23 = arith.constant 0 : index
    %40 = vector.load %arg14[%c0_21, %c0_22, %c0_23] : memref<8x8x32xf32, #tpu.memory_space<vmem>>, vector<8x8x32xf32>
    tpu.vector_store %arg14[%c0_21, %c0_22, %c0_23], %39 {strides = array<i32>} : memref<8x8x32xf32, #tpu.memory_space<vmem>>, vector<8x8x32xf32>,
    %c0_24 = arith.constant 0 : index
    %c0_25 = arith.constant 0 : index
    %41 = vector.load %arg15[%c0_24, %c0_25] : memref<8x8xf32, #tpu.memory_space<vmem>>, vector<8x8xf32>
    %cst_26 = arith.constant dense<0.000000e+00> : vector<8x8xf32>
    %42 = vector.multi_reduction <add>, %35, %cst_26 [1] : vector<8x8x8xf32> to vector<8x8xf32>
    %43 = arith.addf %41, %42 : vector<8x8xf32>
    %c0_27 = arith.constant 0 : index
    %c0_28 = arith.constant 0 : index
    %44 = vector.load %arg15[%c0_27, %c0_28] : memref<8x8xf32, #tpu.memory_space<vmem>>, vector<8x8xf32>
    tpu.vector_store %arg15[%c0_27, %c0_28], %43 {strides = array<i32>} : memref<8x8xf32, #tpu.memory_space<vmem>>, vector<8x8xf32>,
    %c0_i32_29 = arith.constant 0 : i32
    %45 = arith.cmpi eq, %arg1, %c0_i32_29 : i32
    %46 = arith.extui %45 : i1 to i32
    %c0_i32_30 = arith.constant 0 : i32
    %47 = arith.cmpi ne, %46, %c0_i32_30 : i32
    scf.if %47 {
      %c0_31 = arith.constant 0 : index
      %c0_32 = arith.constant 0 : index
      %c0_33 = arith.constant 0 : index
      %c0_34 = arith.constant 0 : index
      %48 = vector.load %arg2[%c0_31, %c0_32, %c0_33, %c0_34] : memref<1x8x8x32xbf16, #tpu.memory_space<vmem>>, vector<1x8x8x32xbf16>
      %49 = vector.shape_cast %48 : vector<1x8x8x32xbf16> to vector<8x8x32xbf16>
      %50 = arith.extf %49 : vector<8x8x32xbf16> to vector<8x8x32xf32>
      %c0_35 = arith.constant 0 : index
      %c0_36 = arith.constant 0 : index
      %c0_37 = arith.constant 0 : index
      %51 = vector.load %arg14[%c0_35, %c0_36, %c0_37] : memref<8x8x32xf32, #tpu.memory_space<vmem>>, vector<8x8x32xf32>
      %c0_38 = arith.constant 0 : index
      %c0_39 = arith.constant 0 : index
      %52 = vector.load %arg15[%c0_38, %c0_39] : memref<8x8xf32, #tpu.memory_space<vmem>>, vector<8x8xf32>
      %53 = vector.shape_cast %52 : vector<8x8xf32> to vector<8x8x1xf32>
      %cst_40 = arith.constant 9.99999971E-10 : f32
      %54 = vector.broadcast %cst_40 : f32 to vector<8x8x1xf32>
      %55 = arith.addf %54, %53 : vector<8x8x1xf32>
      %56 = vector.broadcast %55 : vector<8x8x1xf32> to vector<8x8x32xf32>
      %57 = arith.divf %51, %56 : vector<8x8x32xf32>
      %58 = arith.subf %50, %57 : vector<8x8x32xf32>
      %59 = vector.shape_cast %58 : vector<8x8x32xf32> to vector<64x32xf32>
      %60 = arith.truncf %59 : vector<64x32xf32> to vector<64x32xbf16>
      %c0_41 = arith.constant 0 : index
      %c0_42 = arith.constant 0 : index
      %61 = vector.load %arg8[%c0_41, %c0_42] : memref<32x32xbf16, #tpu.memory_space<vmem>>, vector<32x32xbf16>
      %cst_43 = arith.constant dense<0.000000e+00> : vector<64x32xf32>
      %62 = tpu.matmul %60, %61, %cst_43 {dimension_numbers = #tpu.dot_dimension_numbers<[1], [0], [0], [1], [0, 0, 1, 1], [], []>} : vector<64x32xbf16>, vector<32x32xbf16>, vector<64x32xf32> -> vector<64x32xf32>
      %c0_44 = arith.constant 0 : index
      %c0_45 = arith.constant 0 : index
      %63 = vector.load %arg9[%c0_44, %c0_45] : memref<1x32xf32, #tpu.memory_space<vmem>>, vector<1x32xf32>
      %64 = vector.broadcast %63 : vector<1x32xf32> to vector<64x32xf32>
      %65 = arith.addf %62, %64 : vector<64x32xf32>
      %cst_46 = arith.constant 0.000000e+00 : f32
      %66 = vector.broadcast %cst_46 : f32 to vector<64x32xf32>
      %67 = arith.maximumf %65, %66 : vector<64x32xf32>
      %68 = vector.shape_cast %67 : vector<64x32xf32> to vector<8x8x32xf32>
      %69 = arith.addf %68, %50 : vector<8x8x32xf32>
      %cst_47 = arith.constant dense<0xFF800000> : vector<8x32xf32>
      %70 = vector.multi_reduction <maximumf>, %69, %cst_47 [0] : vector<8x8x32xf32> to vector<8x32xf32>
      %71 = arith.truncf %70 : vector<8x32xf32> to vector<8x32xbf16>
      %c0_48 = arith.constant 0 : index
      %c0_49 = arith.constant 0 : index
      %72 = vector.load %arg10[%c0_48, %c0_49] : memref<32x32xbf16, #tpu.memory_space<vmem>>, vector<32x32xbf16>
      %cst_50 = arith.constant dense<0.000000e+00> : vector<8x32xf32>
      %73 = tpu.matmul %71, %72, %cst_50 {dimension_numbers = #tpu.dot_dimension_numbers<[1], [0], [0], [1], [0, 0, 1, 1], [], []>} : vector<8x32xbf16>, vector<32x32xbf16>, vector<8x32xf32> -> vector<8x32xf32>
      %c0_51 = arith.constant 0 : index
      %c0_52 = arith.constant 0 : index
      %74 = vector.load %arg11[%c0_51, %c0_52] : memref<1x32xf32, #tpu.memory_space<vmem>>, vector<1x32xf32>
      %75 = vector.broadcast %74 : vector<1x32xf32> to vector<8x32xf32>
      %76 = arith.addf %73, %75 : vector<8x32xf32>
      %cst_53 = arith.constant 0.000000e+00 : f32
      %77 = vector.broadcast %cst_53 : f32 to vector<8x32xf32>
      %78 = arith.maximumf %76, %77 : vector<8x32xf32>
      %79 = tpu.transpose %78, [1, 0] : vector<8x32xf32> -> vector<32x8xf32>
      %c0_54 = arith.constant 0 : index
      %c0_55 = arith.constant 0 : index
      %c0_56 = arith.constant 0 : index
      %80 = vector.load %arg12[%c0_54, %c0_55, %c0_56] : memref<1x32x8xf32, #tpu.memory_space<vmem>>, vector<1x32x8xf32>
      %81 = vector.shape_cast %80 : vector<1x32x8xf32> to vector<32x8xf32>
      %82 = vector.shape_cast %79 : vector<32x8xf32> to vector<1x32x8xf32>
      tpu.vector_store %arg12[%c0_54, %c0_55, %c0_56], %82 {strides = array<i32>} : memref<1x32x8xf32, #tpu.memory_space<vmem>>, vector<1x32x8xf32>,
    } else {
    }
    return
  }
  func.func @transform_0(%arg0: i32, %arg1: i32) -> (i32, i32, i32, i32) {
    %c0_i32 = arith.constant 0 : i32
    %c0_i32_0 = arith.constant 0 : i32
    %c0_i32_1 = arith.constant 0 : i32
    %c0_i32_2 = arith.constant 0 : i32
    return %arg0, %c0_i32, %c0_i32_0, %c0_i32_1 : i32, i32, i32, i32
  }
  func.func @transform_1(%arg0: i32, %arg1: i32) -> (i32, i32, i32, i32) {
    %c0_i32 = arith.constant 0 : i32
    %c0_i32_0 = arith.constant 0 : i32
    %c0_i32_1 = arith.constant 0 : i32
    %c0_i32_2 = arith.constant 0 : i32
    return %arg0, %c0_i32, %c0_i32_0, %c0_i32_1 : i32, i32, i32, i32
  }
  func.func @transform_2(%arg0: i32, %arg1: i32) -> (i32, i32) {
    %c0_i32 = arith.constant 0 : i32
    %c0_i32_0 = arith.constant 0 : i32
    %c0_i32_1 = arith.constant 0 : i32
    return %c0_i32, %c0_i32_0 : i32, i32
  }
  func.func @transform_3(%arg0: i32, %arg1: i32) -> (i32, i32) {
    %c0_i32 = arith.constant 0 : i32
    %c0_i32_0 = arith.constant 0 : i32
    %c0_i32_1 = arith.constant 0 : i32
    return %c0_i32, %c0_i32_0 : i32, i32
  }
  func.func @transform_4(%arg0: i32, %arg1: i32) -> (i32, i32) {
    %c0_i32 = arith.constant 0 : i32
    %c0_i32_0 = arith.constant 0 : i32
    %c0_i32_1 = arith.constant 0 : i32
    return %c0_i32, %c0_i32_0 : i32, i32
  }
  func.func @transform_5(%arg0: i32, %arg1: i32) -> (i32, i32) {
    %c0_i32 = arith.constant 0 : i32
    %c0_i32_0 = arith.constant 0 : i32
    %c0_i32_1 = arith.constant 0 : i32
    return %c0_i32, %c0_i32_0 : i32, i32
  }
  func.func @transform_6(%arg0: i32, %arg1: i32) -> (i32, i32) {
    %c0_i32 = arith.constant 0 : i32
    %c0_i32_0 = arith.constant 0 : i32
    %c0_i32_1 = arith.constant 0 : i32
    return %c0_i32, %c0_i32_0 : i32, i32
  }
  func.func @transform_7(%arg0: i32, %arg1: i32) -> (i32, i32) {
    %c0_i32 = arith.constant 0 : i32
    %c0_i32_0 = arith.constant 0 : i32
    %c0_i32_1 = arith.constant 0 : i32
    return %c0_i32, %c0_i32_0 : i32, i32
  }
  func.func @transform_8(%arg0: i32, %arg1: i32) -> (i32, i32) {
    %c0_i32 = arith.constant 0 : i32
    %c0_i32_0 = arith.constant 0 : i32
    %c0_i32_1 = arith.constant 0 : i32
    return %c0_i32, %c0_i32_0 : i32, i32
  }
  func.func @transform_9(%arg0: i32, %arg1: i32) -> (i32, i32) {
    %c0_i32 = arith.constant 0 : i32
    %c0_i32_0 = arith.constant 0 : i32
    %c0_i32_1 = arith.constant 0 : i32
    return %c0_i32, %c0_i32_0 : i32, i32
  }
  func.func @transform_10(%arg0: i32, %arg1: i32) -> (i32, i32, i32) {
    %c0_i32 = arith.constant 0 : i32
    %c0_i32_0 = arith.constant 0 : i32
    %c0_i32_1 = arith.constant 0 : i32
    return %arg0, %c0_i32, %c0_i32_0 : i32, i32, i32
  }
}

</mosaic_0001>

<bundles_post_ra>
// kernel: attentive_sa_forward.2
= control target key start
LH: loop header
LB: loop body
LE: loop exit
PB: predicated region body
PF: predicated region fallthrough
CT: control target
= control target key end

     0   :  { %vm50_vm0 = vcmask 1042432   ;;  %vm51_vm1 = vcmask 1043456   ;;  %vm43_vm2 = vcmask 56320   ;;  %v251_v1 = vmov 65535   ;;  %s312_s1 = inlined_call_operand.vmem [shape: bf16[7,16], index: 1, kind: input, shape index: {}]   ;;  %s313_s0 = inlined_call_operand.vmem [shape: bf16[32,7], index: 0, kind: input, shape index: {}]   ;;  %s314_s3 = inlined_call_operand.vmem [shape: bf16[16,32], index: 3, kind: input, shape index: {}]   ;;  %s315_s2 = inlined_call_operand.vmem [shape: f32[1,16], index: 2, kind: input, shape index: {}]   ;;  %s316_s4 = inlined_call_operand.vmem [shape: f32[1,32], index: 4, kind: input, shape index: {}]   ;;  %s317_s5 = inlined_call_operand.vmem [shape: bf16[32,32], index: 5, kind: output, shape index: {}]  }
   0x1   :  { %v25_v0 = vld [vmem:[%s312_s1] sm:$0xf]  ;;  %v52_v2 = vsel %vm50_vm0, 4294967295, %v251_v1  ;;  %v249_v6 = vld [vmem:[%s313_s0 + $0x8] sm:$0xff]   ;;  %vm127_vm3 = vcmask 130048   ;;  %vm203_vm4 = vcmask 257024  }
   0x2   :  { %v248_v3 = vld [vmem:[%s313_s0] sm:$0xff]   ;;  %v53_v4 = vsel %vm51_vm1, %v52_v2, 0 }
   0x3   :  { %v55_v5 = vand.u32 %v53_v4, %v25_v0  ;;  %237 = vmatprep.mubr.msk.bf16.mxu0 %vm43_vm2, %v248_v3  ;;  %v250_v7 = vld [vmem:[%s314_s3] sm:$0xff]  }
   0x4   :  { %241 = vmatprep.subr.bf16.mxu1 %v250_v7  ;;  %v212_v8 = vld [vmem:[%s315_s2] ss:$0 sm:$0xff] }
   0x5   :  { %235 = vmatprep.subr.bf16.mxu0 %v55_v5  ;;  %242 = vmatpush3.bf16.msra.mxu1 %v250_v7  ;;  %v217_v23 = vld [vmem:[%s316_s4] ss:$0 sm:$0xff] }
   0x6   :  { %236 = vmatpush3.bf16.msra.mxu0 %v55_v5 }
   0x9   :  { %238 = vmatmul.mubr.msk.bf16.vlgmr.msra.gmra.mrb[0].mxu0 %vm43_vm2, %v249_v6 }
  0xdc   :  { %v239_v9 = vpop.f32.mrb[0].mxu0 }
  0xdd   :  { %v100_v10 = vadd.f32 %v239_v9, %v212_v8  ;;  %v91_v11 = vpop.f32.mrb[1].mxu0 }
  0xde   :  { %v92_v12 = vadd.f32 %v212_v8, %v91_v11  ;;  %v240_v13 = vpop.f32.mrb[2].mxu0 }
  0xdf   :  { %v103_v14 = vadd.f32 %v240_v13, %v212_v8  ;;  %v94_v15 = vpop.f32.mrb[3].mxu0  ;;  %v108_v17 = vmax.f32 %v100_v10, 0.0 }
  0xe0   :  { %v95_v16 = vadd.f32 %v212_v8, %v94_v15  ;;  %v106_v19 = vmax.f32 %v92_v12, 0.0 }
  0xe1   :  { %v109_v18 = vmax.f32 %v103_v14, 0.0 }
  0xe2   :  { %v107_v20 = vmax.f32 %v95_v16, 0.0 }
  0xe3   :  { %v111_v21 = vpack.c.bf16 %v109_v18, %v108_v17 }
  0xe4   :  { %v110_v22 = vpack.c.bf16 %v107_v20, %v106_v19 }
  0xe6   :  { %243 = vmatprep.mubr.msk.bf16.mxu1 %vm127_vm3, %v110_v22 }
  0xe7   :  { %244 = vmatmul.mubr.msk.bf16.vlgmr.msra.gmra.mrb[0].mxu1 %vm127_vm3, %v111_v21 }
 0x1ba   :  { %v245_v24 = vpop.f32.mrb[0].mxu1 }
 0x1bb   :  { %v177_v25 = vadd.f32 %v245_v24, %v217_v23  ;;  %v168_v26 = vpop.f32.mrb[1].mxu1 }
 0x1bc   :  { %v169_v27 = vadd.f32 %v217_v23, %v168_v26  ;;  %v246_v28 = vpop.f32.mrb[2].mxu1 }
 0x1bd   :  { %v185_v29 = vmax.f32 %v177_v25, 0.0  ;;  %v180_v30 = vadd.f32 %v246_v28, %v217_v23  ;;  %v171_v31 = vpop.f32.mrb[3].mxu1 }
 0x1be   :  { %v183_v32 = vmax.f32 %v169_v27, 0.0  ;;  %v172_v33 = vadd.f32 %v217_v23, %v171_v31 }
 0x1bf   :  { %v227_v34 = vpack.c.bf16 %v185_v29, %v185_v29  ;;  %v186_v35 = vmax.f32 %v180_v30, 0.0 }
 0x1c0   :  { %v225_v36 = vpack.c.bf16 %v183_v32, %v183_v32  ;;  %v184_v37 = vmax.f32 %v172_v33, 0.0 }
 0x1c1   :  { %206 = vst.msk [vmem:[%s317_s5 + $0x8] sm:$0xf] %vm203_vm4, %v227_v34  ;;  %v228_v38 = vpack.c.bf16 %v186_v35, %v186_v35 }
 0x1c2   :  { %204 = vst.msk [vmem:[%s317_s5] sm:$0xf] %vm203_vm4, %v225_v36  ;;  %v226_v39 = vpack.c.bf16 %v184_v37, %v184_v37 }
 0x1c3   :  { %207 = vst.msk [vmem:[%s317_s5 + $0xc] sm:$0xf] %vm203_vm4, %v228_v38 }
 0x1c4   :  { %205 = vst.msk [vmem:[%s317_s5 + $0x4] sm:$0xf] %vm203_vm4, %v226_v39 }

// kernel: attentive_sa_forward.3
= control target key start
LH: loop header
LB: loop body
LE: loop exit
PB: predicated region body
PF: predicated region fallthrough
CT: control target
= control target key end

     0   :  { %s2966_s13 = smov 0   ;;  %s2968_s14 = smov 0   ;;  %s3370_s0 = inlined_call_operand.vmem [shape: bf16[2,8,8,32], index: 0, kind: input, shape index: {}]   ;;  %s3371_s1 = inlined_call_operand.vmem [shape: bf16[2,8,8,3], index: 1, kind: input, shape index: {}]   ;;  %s3372_s2 = inlined_call_operand.vmem [shape: bf16[32,8], index: 2, kind: input, shape index: {}]   ;;  %s3373_s3 = inlined_call_operand.vmem [shape: bf16[3,8], index: 3, kind: input, shape index: {}]   ;;  %s3374_s4 = inlined_call_operand.vmem [shape: bf16[32,40], index: 4, kind: input, shape index: {}]   ;;  %s3375_s5 = inlined_call_operand.vmem [shape: bf16[3,40], index: 5, kind: input, shape index: {}]   ;;  %s3376_s6 = inlined_call_operand.vmem [shape: bf16[32,32], index: 6, kind: input, shape index: {}]   ;;  %s3377_s7 = inlined_call_operand.vmem [shape: f32[1,32], index: 7, kind: input, shape index: {}]   ;;  %s3378_s8 = inlined_call_operand.vmem [shape: bf16[32,32], index: 8, kind: input, shape index: {}]   ;;  %s3379_s9 = inlined_call_operand.vmem [shape: f32[1,32], index: 9, kind: input, shape index: {}]   ;;  %s3380_s10 = inlined_call_operand.vmem [shape: f32[2,32,8], index: 10, kind: output, shape index: {}]  }
   0x1   :  { %s2970_s15 = smov 0  }
   0x2 LB: > { %s32_s16 = sadd.s32 1, %s2901_s14  ;;  %p2449_p0 = scmp.ge.s32.totalorder %s2905_s15, 1  ;;  %s2905_s15 = sphi %s2970_s15, %s20_s15   ;;  %s2901_s14 = sphi %s2968_s14, %s3382_s14   ;;  %s2897_s13 = sphi %s2966_s13, %s3381_s13  }
   0x3   : > { %p34_p1 = scmp.ge.s32.totalorder %s32_s16, 2  ;;  %p334_p2 = scmp.lt.s32.totalorder %s2905_s15, 3 }
   0x5   : > { %s3384_s16 = smov (%p34_p1, %s32_s16), 0  ;;  %p335_p3 = pnand %p2449_p0, %p334_p2 }
   0x6   : > { %v417_v0 = vld [vmem:[%s3373_s3] sm:$0x3] (!%p335_p3)  ;;  %vm451_vm0 = vcmask (!%p335_p3), 1040384   ;;  %vm452_vm1 = vcmask (!%p335_p3), 1041408   ;;  %p377_p4 = scmp.lt.s32.totalorder (!%p335_p3), %s2897_s13, 1  ;;  %v2907_v1 = vmov (!%p335_p3), 65535  }
   0x7   : > { %338 = sbr.rel (%p335_p3) target bundleno = 1772 (0x6ec), region = 60  ;;  %v453_v2 = vsel (!%p335_p3), %vm451_vm0, 4294967295, %v2907_v1  ;;  %v687_v3 = vld [vmem:[%s3375_s5] sm:$0x3] (!%p335_p3)  ;;  %vm438_vm2 = vcmask (!%p335_p3), 23552   ;;  %v2818_v9 = vld [vmem:[%s3372_s2 + $0x8] sm:$0xff] (!%p335_p3)  }
   0x8   : > { %v454_v4 = vsel (!%p335_p3), %vm452_vm1, %v453_v2, 0  ;;  %v2817_v5 = vld [vmem:[%s3372_s2] sm:$0xff] (!%p335_p3)   ;;  %v2824_v12 = vld [vmem:[%s3374_s4 + $0x8] sm:$0xff] (!%p335_p3)   ;;  %vm555_vm3 = vcmask (!%p335_p3), 261120   ;;  %vm658_vm4 = vcmask (!%p335_p3), 64512   ;;  %v2908_v27 = vmov (!%p335_p3), 0.0  }
   0x9   : > { %v456_v6 = vand.u32 (!%p335_p3), %v454_v4, %v417_v0  ;;  %v726_v7 = vand.u32 (!%p335_p3), %v687_v3, %v454_v4  ;;  %v2821_v8 = vld [vmem:[%s3374_s4] sm:$0xff] (!%p335_p3)   ;;  %650 = vst.msk [vmem:[#allocation3] sm:$0xff] (!%p335_p3), %vm555_vm3, %v2908_v27  ;;  %651 = vst.msk [vmem:[#allocation3 + $0x8] sm:$0xff] (!%p335_p3), %vm555_vm3, %v2908_v27  ;;  %vm2909_vm5 = vmmov (!%p335_p3), 0   ;;  %vm641_vm6 = vcmask (!%p335_p3), 60416   ;;  %s2910_s19 = smov (!%p335_p3), 120  }
   0xa   : > { %652 = vst.msk [vmem:[#allocation3 + $0x10] sm:$0xff] (!%p335_p3), %vm555_vm3, %v2908_v27  ;;  %653 = vst.msk [vmem:[#allocation3 + $0x18] sm:$0xff] (!%p335_p3), %vm555_vm3, %v2908_v27  ;;  %vm1414_vm7 = vcmask (!%p335_p3), 1043456   ;;  %vm1994_vm8 = vcmask (!%p335_p3), 1041409   ;;  %vm1996_vm9 = vcmask (!%p335_p3), 1042434   ;;  %vm1998_vm10 = vcmask (!%p335_p3), 1043459  }
   0xb   : > { %2606 = vmatprep.subr.bf16.mxu0 (!%p335_p3), %v456_v6  ;;  %2628 = vmatprep.subr.bf16.mxu1 (!%p335_p3), %v726_v7  ;;  %654 = vst.msk [vmem:[#allocation3 + $0x20] sm:$0xff] (!%p335_p3), %vm555_vm3, %v2908_v27  ;;  %655 = vst.msk [vmem:[#allocation3 + $0x28] sm:$0xff] (!%p335_p3), %vm555_vm3, %v2908_v27  ;;  %vm2000_vm11 = vcmask (!%p335_p3), 1044484   ;;  %vm2002_vm12 = vcmask (!%p335_p3), 1045509   ;;  %vm2004_vm13 = vcmask (!%p335_p3), 1046534   ;;  %vm2006_vm14 = vcmask (!%p335_p3), 1047559  }
   0xc   : > { %2607 = vmatpush3.bf16.msra.mxu0 (!%p335_p3), %v456_v6  ;;  %2629 = vmatpush3.bf16.msra.mxu1 (!%p335_p3), %v726_v7  ;;  %656 = vst.msk [vmem:[#allocation3 + $0x30] sm:$0xff] (!%p335_p3), %vm555_vm3, %v2908_v27  ;;  %657 = vst.msk [vmem:[#allocation3 + $0x38] sm:$0xff] (!%p335_p3), %vm555_vm3, %v2908_v27 }
   0xd   : > { %2616 = vmatprep.subr.bf16.mxu0 (!%p335_p3), %v2817_v5  ;;  %2638 = vmatprep.subr.bf16.mxu1 (!%p335_p3), %v2821_v8  ;;  %659 = vst.msk [vmem:[#allocation4] sm:$0xff] (!%p335_p3), %vm658_vm4, %v2908_v27 }
   0xe   : > { %s3386_s13 = smov (!%p377_p4, %s2897_s13), 1 }
   0xf   : > { %s2993_s23 = sshll.u32 %s3386_s13, 5 }
  0x10   : > { %s386_s28 = scalar_lea.vmem %s3371_s1, %s2993_s23  ;;  %s3015_s18 = scalar_lea.vmem %s3370_s0, %s2993_s23 }
  0x11   : > { %v2811_v10 = vld [vmem:[%s386_s28] sm:$0xff]   ;;  %v2812_v11 = vld [vmem:[%s386_s28 + $0x8] sm:$0xff]   ;;  %v2815_v15 = vld [vmem:[%s386_s28 + $0x10] sm:$0xff]  }
  0x12   : > { %2608 = vmatprep.mubr.msk.bf16.mxu0 %vm438_vm2, %v2811_v10  ;;  %v2813_v13 = vld [vmem:[%s386_s28] sm:$0xff]   ;;  %v2814_v14 = vld [vmem:[%s386_s28 + $0x8] sm:$0xff]   ;;  %v2819_v16 = vld [vmem:[%s386_s28 + $0x10] sm:$0xff]  }
  0x13   : > { %2609 = vmatmul.mubr.msk.bf16.vlgmr.msra.gmra.mrb[0].mxu0 %vm438_vm2, %v2812_v11  ;;  %2630 = vmatprep.mubr.msk.bf16.mxu1 %vm438_vm2, %v2813_v13  ;;  %v2816_v17 = vld [vmem:[%s386_s28 + $0x18] sm:$0xff]   ;;  %v2822_v18 = vld [vmem:[%s3015_s18] sm:$0xff]   ;;  %v2823_v21 = vld [vmem:[%s3015_s18 + $0x8] sm:$0xff]  }
  0x14   : > { %2617 = vmatpush3.bf16.msra.mxu0 %v2817_v5  ;;  %2631 = vmatmul.mubr.msk.bf16.vlgmr.msra.gmra.mrb[0].mxu1 %vm438_vm2, %v2814_v14  ;;  %v2820_v19 = vld [vmem:[%s386_s28 + $0x18] sm:$0xff]   ;;  %v2825_v20 = vld [vmem:[%s3015_s18] sm:$0xff]   ;;  %v2826_v22 = vld [vmem:[%s3015_s18 + $0x8] sm:$0xff]  }
  0x15   : > { %2618 = vmatprep.subr.bf16.mxu0 %v2818_v9  ;;  %2612 = vmatprep.mubr.msk.bf16.mxu0 %vm438_vm2, %v2815_v15  ;;  %v2827_v23 = vld [vmem:[%s3015_s18 + $0x10] sm:$0xff]   ;;  %v2828_v25 = vld [vmem:[%s3015_s18 + $0x18] sm:$0xff]  }
  0x16   : > { %2639 = vmatpush3.bf16.msra.mxu1 %v2821_v8  ;;  %2634 = vmatprep.mubr.msk.bf16.mxu1 %vm438_vm2, %v2819_v16  ;;  %v2829_v24 = vld [vmem:[%s3015_s18 + $0x10] sm:$0xff]   ;;  %v2830_v26 = vld [vmem:[%s3015_s18 + $0x18] sm:$0xff]  }
  0x17   : > { %2640 = vmatprep.subr.bf16.mxu1 %v2824_v12 }
  0x18   : > { %2619 = vmatpush3.bf16.msra.mxu0 %v2818_v9 }
  0x19   : > { %2650 = vmatprep.subr.bf16.mxu0 %v2908_v27 }
  0x1a   : > { %2641 = vmatpush3.bf16.msra.mxu1 %v2824_v12 }
  0x1b   : > { %2613 = vmatmul.mubr.msk.bf16.gmra.mrb[4].mxu0 %vm438_vm2, %v2816_v17  ;;  %2656 = vmatprep.subr.bf16.mxu1 %v2908_v27 }
  0x1c   : > { %2620 = vmatprep.mubr.msk.bf16.mxu0 %vm555_vm3, %v2822_v18  ;;  %2635 = vmatmul.mubr.msk.bf16.gmra.mrb[4].mxu1 %vm438_vm2, %v2820_v19 }
  0x1d   : > { %2642 = vmatprep.mubr.msk.bf16.mxu1 %vm555_vm3, %v2825_v20 }
  0x23   : > { %2621 = vmatmul.mubr.msk.bf16.vlgmr.msra.gmra.mrb[0].mxu0 %vm555_vm3, %v2823_v21 }
  0x24   : > { %2624 = vmatprep.mubr.msk.bf16.mxu0 %vm555_vm3, %v2827_v23  ;;  %2643 = vmatmul.mubr.msk.bf16.vlgmr.msra.gmra.mrb[0].mxu1 %vm555_vm3, %v2826_v22 }
  0x25   : > { %2646 = vmatprep.mubr.msk.bf16.mxu1 %vm555_vm3, %v2829_v24 }
  0x2b   : > { %2625 = vmatmul.mubr.msk.bf16.gmra.mrb[4].mxu0 %vm555_vm3, %v2828_v25 }
  0x2c   : > { %2647 = vmatmul.mubr.msk.bf16.gmra.mrb[4].mxu1 %vm555_vm3, %v2830_v26  ;;  %2652 = vmatprep.mubr.msk.bf16.mxu0 %vm2909_vm5, %v2908_v27 }
  0x2d   : > { %2658 = vmatprep.mubr.msk.bf16.mxu1 %vm2909_vm5, %v2908_v27 }
  0xf6   : > { %v2622_v28 = vpop.f32.mrb[0].mxu0 }
  0xf7   : > { %v635_v29 = vpack.c.bf16 %v2622_v28, %v2622_v28  ;;  %v602_v30 = vpop.f32.mrb[1].mxu0  ;;  %v2644_v33 = vpop.f32.mrb[0].mxu1 }
  0xf8   : > { %v633_v31 = vpack.c.bf16 %v602_v30, %v602_v30  ;;  %v2623_v32 = vpop.f32.mrb[2].mxu0  ;;  %v872_v36 = vpop.f32.mrb[1].mxu1  ;;  %v3090_v63 = vpack.c.bf16 %v2644_v33, %v2644_v33 }
  0xf9   : > { %644 = vst.msk [vmem:[#allocation2 + $0x8] sm:$0xf] %vm641_vm6, %v635_v29  ;;  %v636_v34 = vpack.c.bf16 %v2623_v32, %v2623_v32  ;;  %v605_v35 = vpop.f32.mrb[3].mxu0  ;;  %v2645_v38 = vpop.f32.mrb[2].mxu1  ;;  %v3074_v57 = vpack.c.bf16 %v872_v36, %v872_v36 }
  0xfa   : > { %642 = vst.msk [vmem:[#allocation2] sm:$0xf] %vm641_vm6, %v633_v31  ;;  %v634_v37 = vpack.c.bf16 %v605_v35, %v605_v35  ;;  %v875_v39 = vpop.f32.mrb[3].mxu1  ;;  %v3092_v1 = vpack.c.bf16 %v2645_v38, %v2645_v38 }
  0xfb   : > { %645 = vst.msk [vmem:[#allocation2 + $0xc] sm:$0xf] %vm641_vm6, %v636_v34  ;;  %v3076_v59 = vpack.c.bf16 %v875_v39, %v875_v39 }
  0xfc   : > { %643 = vst.msk [vmem:[#allocation2 + $0x4] sm:$0xf] %vm641_vm6, %v634_v37 }
  0xfe   : > { %v2626_v40 = vpop.f32.mrb[4].mxu0 }
  0xff   : > { %v639_v41 = vpack.c.bf16 %v2626_v40, %v2626_v40  ;;  %v618_v42 = vpop.f32.mrb[5].mxu0  ;;  %v2648_v45 = vpop.f32.mrb[4].mxu1 }
 0x100   : > { %v637_v43 = vpack.c.bf16 %v618_v42, %v618_v42  ;;  %v2627_v44 = vpop.f32.mrb[6].mxu0  ;;  %v888_v49 = vpop.f32.mrb[5].mxu1  ;;  %v913_v56 = vld [vmem:[#allocation2 + $0x8] sm:$0xf]  ;;  %v3122_v10 = vpack.c.bf16 %v2648_v45, %v2648_v45 }
 0x101   : > { %648 = vst.msk [vmem:[#allocation2 + $0x18] sm:$0xf] %vm641_vm6, %v639_v41  ;;  %v640_v46 = vpack.c.bf16 %v2627_v44, %v2627_v44  ;;  %v621_v47 = vpop.f32.mrb[7].mxu0  ;;  %v911_v48 = vld [vmem:[#allocation2] sm:$0xf]  ;;  %v2649_v52 = vpop.f32.mrb[6].mxu1  ;;  %v3106_v5 = vpack.c.bf16 %v888_v49, %v888_v49 }
 0x102   : > { %646 = vst.msk [vmem:[#allocation2 + $0x10] sm:$0xf] %vm641_vm6, %v637_v43  ;;  %v638_v50 = vpack.c.bf16 %v621_v47, %v621_v47  ;;  %v924_v51 = vsel %vm658_vm4, %v911_v48, 0  ;;  %v891_v54 = vpop.f32.mrb[7].mxu1  ;;  %v914_v58 = vld [vmem:[#allocation2 + $0xc] sm:$0xf]  ;;  %v3124_v11 = vpack.c.bf16 %v2649_v52, %v2649_v52 }
 0x103   : > { %649 = vst.msk [vmem:[#allocation2 + $0x1c] sm:$0xf] %vm641_vm6, %v640_v46  ;;  %2651 = vmatpush3.bf16.xpose.msra.mxu0 %v924_v51  ;;  %v912_v53 = vld [vmem:[#allocation2 + $0x4] sm:$0xf]  ;;  %v1016_v60 = vsel %vm658_vm4, %v913_v56, 0  ;;  %v1062_v61 = vsel %vm658_vm4, %v914_v58, 0  ;;  %v3108_v7 = vpack.c.bf16 %v891_v54, %v891_v54 }
 0x104   : > { %647 = vst.msk [vmem:[#allocation2 + $0x14] sm:$0xf] %vm641_vm6, %v638_v50  ;;  %v970_v55 = vsel %vm658_vm4, %v912_v53, 0  ;;  %2662 = vmatprep.subr.bf16.mxu0 %v2908_v27 }
 0x105   : > { %2657 = vmatpush3.bf16.xpose.msra.mxu1 %v970_v55 }
 0x106   : > { %2668 = vmatprep.subr.bf16.mxu1 %v2908_v27 }
 0x108   : > { %v917_v4 = vld [vmem:[#allocation2 + $0x18] sm:$0xf] }
 0x109   : > { %v915_v62 = vld [vmem:[#allocation2 + $0x10] sm:$0xf]  ;;  %v1200_v8 = vsel %vm658_vm4, %v917_v4, 0 }
 0x10a   : > { %2653 = vmatmul.mubr.msk.bf16.vlgmr.msra.gmra.mrb[8].mxu0 %vm658_vm4, %v3074_v57  ;;  %v1108_v2 = vsel %vm658_vm4, %v915_v62, 0  ;;  %v918_v6 = vld [vmem:[#allocation2 + $0x1c] sm:$0xf] }
 0x10b   : > { %2663 = vmatpush3.bf16.xpose.msra.mxu0 %v1016_v60  ;;  %2664 = vmatprep.mubr.msk.bf16.mxu0 %vm2909_vm5, %v2908_v27  ;;  %v916_v0 = vld [vmem:[#allocation2 + $0x14] sm:$0xf]  ;;  %v1246_v9 = vsel %vm658_vm4, %v918_v6, 0 }
 0x10c   : > { %2659 = vmatmul.mubr.msk.bf16.vlgmr.msra.gmra.mrb[8].mxu1 %vm658_vm4, %v3076_v59  ;;  %2674 = vmatprep.subr.bf16.mxu0 %v2908_v27  ;;  %v1154_v3 = vsel %vm658_vm4, %v916_v0, 0 }
 0x10d   : > { %2669 = vmatpush3.bf16.xpose.msra.mxu1 %v1062_v61  ;;  %2670 = vmatprep.mubr.msk.bf16.mxu1 %vm2909_vm5, %v2908_v27 }
 0x10e   : > { %2680 = vmatprep.subr.bf16.mxu1 %v2908_v27 }
 0x112   : > { %2665 = vmatmul.mubr.msk.bf16.vlgmr.msra.gmra.mrb[12].mxu0 %vm658_vm4, %v3090_v63 }
 0x113   : > { %2675 = vmatpush3.bf16.xpose.msra.mxu0 %v1108_v2  ;;  %2676 = vmatprep.mubr.msk.bf16.mxu0 %vm2909_vm5, %v2908_v27 }
 0x114   : > { %2671 = vmatmul.mubr.msk.bf16.vlgmr.msra.gmra.mrb[12].mxu1 %vm658_vm4, %v3092_v1  ;;  %2686 = vmatprep.subr.bf16.mxu0 %v2908_v27 }
 0x115   : > { %2681 = vmatpush3.bf16.xpose.msra.mxu1 %v1154_v3  ;;  %2682 = vmatprep.mubr.msk.bf16.mxu1 %vm2909_vm5, %v2908_v27 }
 0x116   : > { %2692 = vmatprep.subr.bf16.mxu1 %v2908_v27 }
 0x11a   : > { %2677 = vmatmul.mubr.msk.bf16.vlgmr.msra.gmra.mrb[16].mxu0 %vm658_vm4, %v3106_v5 }
 0x11b   : > { %2687 = vmatpush3.bf16.xpose.msra.mxu0 %v1200_v8  ;;  %2688 = vmatprep.mubr.msk.bf16.mxu0 %vm2909_vm5, %v2908_v27 }
 0x11c   : > { %2683 = vmatmul.mubr.msk.bf16.vlgmr.msra.gmra.mrb[16].mxu1 %vm658_vm4, %v3108_v7  ;;  %2698 = vmatprep.subr.bf16.mxu0 %v2908_v27 }
 0x11d   : > { %2693 = vmatpush3.bf16.xpose.msra.mxu1 %v1246_v9  ;;  %2694 = vmatprep.mubr.msk.bf16.mxu1 %vm2909_vm5, %v2908_v27 }
 0x11e   : > { %2704 = vmatprep.subr.bf16.mxu1 %v2908_v27 }
 0x122   : > { %2689 = vmatmul.mubr.msk.bf16.vlgmr.msra.gmra.mrb[20].mxu0 %vm658_vm4, %v3122_v10 }
 0x123   : > { %2700 = vmatprep.mubr.msk.bf16.mxu0 %vm2909_vm5, %v2908_v27 }
 0x124   : > { %2695 = vmatmul.mubr.msk.bf16.vlgmr.msra.gmra.mrb[20].mxu1 %vm658_vm4, %v3124_v11 }
 0x125   : > { %2706 = vmatprep.mubr.msk.bf16.mxu1 %vm2909_vm5, %v2908_v27 }
 0x1dd   : > { %v960_v12 = vpop.f32.mrb[8].mxu0 }
 0x1de   : > { %v2654_v13 = vpop.f32.mrb[9].mxu0  ;;  %v1288_v14 = vsel %vm658_vm4, %v960_v12, -inf }
 0x1df   : > { %v1006_v15 = vpop.f32.mrb[8].mxu1  ;;  %1289 = vmax.xlane.f32.xlu0 %v1288_v14  ;;  %v963_v16 = vpop.f32.mrb[10].mxu0 }
 0x1e0   : > { %v2655_v17 = vpop.f32.mrb[11].mxu0  ;;  %v2660_v18 = vpop.f32.mrb[9].mxu1  ;;  %v1291_v21 = vsel %vm658_vm4, %v1006_v15, -inf }
 0x1e1   : > { %v1009_v19 = vpop.f32.mrb[10].mxu1 }
 0x1e2   : > { %v2661_v20 = vpop.f32.mrb[11].mxu1 }
 0x1e3   : > { %1292 = vmax.xlane.f32.xlu0 %v1291_v21 }
 0x1e5   : > { %v1052_v22 = vpop.f32.mrb[12].mxu0 }
 0x1e6   : > { %v2666_v23 = vpop.f32.mrb[13].mxu0  ;;  %v1294_v24 = vsel %vm658_vm4, %v1052_v22, -inf }
 0x1e7   : > { %v1098_v25 = vpop.f32.mrb[12].mxu1  ;;  %1295 = vmax.xlane.f32.xlu1 %v1294_v24  ;;  %v1055_v26 = vpop.f32.mrb[14].mxu0 }
 0x1e8   : > { %v2667_v28 = vpop.f32.mrb[15].mxu0  ;;  %v2672_v29 = vpop.f32.mrb[13].mxu1  ;;  %v1297_v32 = vsel %vm658_vm4, %v1098_v25, -inf }
 0x1e9   : > { %v1101_v30 = vpop.f32.mrb[14].mxu1 }
 0x1ea   : > { %v2673_v31 = vpop.f32.mrb[15].mxu1 }
 0x1eb   : > { %1298 = vmax.xlane.f32.xlu1 %v1297_v32 }
 0x1ed   : > { %v1144_v33 = vpop.f32.mrb[16].mxu0 }
 0x1ee   : > { %v2678_v34 = vpop.f32.mrb[17].mxu0  ;;  %v1300_v35 = vsel %vm658_vm4, %v1144_v33, -inf }
 0x1ef   : > { %1301 = vmax.xlane.f32.xlu0 %v1300_v35  ;;  %v1147_v36 = vpop.f32.mrb[18].mxu0  ;;  %v1190_v37 = vpop.f32.mrb[16].mxu1 }
 0x1f0   : > { %v2679_v38 = vpop.f32.mrb[19].mxu0  ;;  %v2684_v39 = vpop.f32.mrb[17].mxu1  ;;  %v1303_v40 = vsel %vm658_vm4, %v1190_v37, -inf }
 0x1f1   : > { %1304 = vmax.xlane.f32.xlu1 %v1303_v40  ;;  %v1193_v41 = vpop.f32.mrb[18].mxu1 }
 0x1f2   : > { %v2685_v42 = vpop.f32.mrb[19].mxu1 }
 0x1f5   : > { %v1236_v43 = vpop.f32.mrb[20].mxu0 }
 0x1f6   : > { %v2690_v44 = vpop.f32.mrb[21].mxu0  ;;  %v1306_v45 = vsel %vm658_vm4, %v1236_v43, -inf }
 0x1f7   : > { %1307 = vmax.xlane.f32.xlu0 %v1306_v45  ;;  %v1239_v46 = vpop.f32.mrb[22].mxu0  ;;  %v1282_v47 = vpop.f32.mrb[20].mxu1 }
 0x1f8   : > { %v2691_v48 = vpop.f32.mrb[23].mxu0  ;;  %v2696_v49 = vpop.f32.mrb[21].mxu1  ;;  %v1309_v50 = vsel %vm658_vm4, %v1282_v47, -inf }
 0x1f9   : > { %1310 = vmax.xlane.f32.xlu1 %v1309_v50  ;;  %v1285_v51 = vpop.f32.mrb[22].mxu1 }
 0x1fa   : > { %v2697_v52 = vpop.f32.mrb[23].mxu1 }
 0x20a   : > { %1475 = vrot.lane.b32.xlu1 %v3076_v59, %s2910_s19 }
 0x20d   : > { %1409 = vrot.lane.b32.xlu0 %v3074_v57, %s2910_s19 }
 0x20e   : > { %1540 = vrot.lane.b32.xlu1 %v3090_v63, %s2910_s19 }
 0x211   : > { %1670 = vrot.lane.b32.xlu0 %v3106_v5, %s2910_s19 }
 0x212   : > { %1605 = vrot.lane.b32.xlu1 %v3092_v1, %s2910_s19 }
 0x216   : > { %1735 = vrot.lane.b32.xlu1 %v3108_v7, %s2910_s19 }
 0x26c   : > { %v1290_v53 = vpop.xlane.xlu0 %1289 }
 0x26d   : > { %v1312_v54 = vsub.f32 %v960_v12, %v1290_v53 }
 0x26f   : > { %v1320_v55 = vmul.f32 1.442695, %v1312_v54 }
 0x270   : > { %v1293_v56 = vpop.xlane.xlu0 %1292 }
 0x271   : > { %2835 = vpow2.f32 %v1320_v55  ;;  %v1313_v58 = vsub.f32 %v1006_v15, %v1293_v56 }
 0x273   : > { %v1322_v59 = vmul.f32 1.442695, %v1313_v58 }
 0x274   : > { %v1296_v57 = vpop.xlane.xlu1 %1295 }
 0x275   : > { %2837 = vpow2.f32 %v1322_v59  ;;  %v1314_v60 = vsub.f32 %v1052_v22, %v1296_v57 }
 0x277   : > { %v1324_v61 = vmul.f32 1.442695, %v1314_v60 }
 0x278   : > { %v1299_v62 = vpop.xlane.xlu1 %1298 }
 0x279   : > { %2839 = vpow2.f32 %v1324_v61  ;;  %v1315_v63 = vsub.f32 %v1098_v25, %v1299_v62 }
 0x27b   : > { %v3154_v0 = vpop.eup %2835  ;;  %v1326_v1 = vmul.f32 1.442695, %v1315_v63 }
 0x27c   : > { %v1302_v2 = vpop.xlane.xlu0 %1301  ;;  %v1336_v3 = vsel %vm658_vm4, %v3154_v0, 0.0 }
 0x27d   : > { %2841 = vpow2.f32 %v1326_v1  ;;  %v1316_v4 = vsub.f32 %v1144_v33, %v1302_v2  ;;  %1337 = vadd.xlane.f32.xlu0 %v1336_v3 }
 0x27e   : > { %v1305_v5 = vpop.xlane.xlu1 %1304 }
 0x27f   : > { %v2838_v6 = vpop.eup %2837  ;;  %v1328_v7 = vmul.f32 1.442695, %v1316_v4  ;;  %v1317_v8 = vsub.f32 %v1190_v37, %v1305_v5 }
 0x280   : > { %v1339_v9 = vsel %vm658_vm4, %v2838_v6, 0.0 }
 0x281   : > { %2843 = vpow2.f32 %v1328_v7  ;;  %v1330_v12 = vmul.f32 1.442695, %v1317_v8  ;;  %1340 = vadd.xlane.f32.xlu1 %v1339_v9 }
 0x283   : > { %v3159_v13 = vpop.eup %2839  ;;  %2845 = vpow2.f32 %v1330_v12 }
 0x284   : > { %v1308_v14 = vpop.xlane.xlu0 %1307  ;;  %v1342_v15 = vsel %vm658_vm4, %v3159_v13, 0.0 }
 0x285   : > { %v1318_v16 = vsub.f32 %v1236_v43, %v1308_v14  ;;  %1343 = vadd.xlane.f32.xlu0 %v1342_v15 }
 0x286   : > { %v1311_v17 = vpop.xlane.xlu1 %1310 }
 0x287   : > { %v3163_v18 = vpop.eup %2841  ;;  %v1332_v19 = vmul.f32 1.442695, %v1318_v16  ;;  %v1319_v20 = vsub.f32 %v1282_v47, %v1311_v17 }
 0x288   : > { %v1410_v21 = vpop.permute.xlu0 %1409  ;;  %v1345_v22 = vsel %vm658_vm4, %v3163_v18, 0.0 }
 0x289   : > { %2847 = vpow2.f32 %v1332_v19  ;;  %v1334_v23 = vmul.f32 1.442695, %v1319_v20  ;;  %v1416_v24 = vsel %vm1414_vm7, %v1410_v21, 0  ;;  %1346 = vadd.xlane.f32.xlu1 %v1345_v22 }
 0x28a   : > { %2699 = vmatpush3.bf16.msra.mxu0 %v1416_v24  ;;  %v1476_v25 = vpop.permute.xlu1 %1475 }
 0x28b   : > { %v3168_v26 = vpop.eup %2843  ;;  %2849 = vpow2.f32 %v1334_v23  ;;  %v1481_v28 = vsel %vm1414_vm7, %v1476_v25, 0  ;;  %2710 = vmatprep.subr.bf16.mxu0 %v2908_v27 }
 0x28c   : > { %2705 = vmatpush3.bf16.msra.mxu1 %v1481_v28  ;;  %v1348_v29 = vsel %vm658_vm4, %v3168_v26, 0.0  ;;  %v3191_v38 = vpop.permute.xlu0 %1670 }
 0x28d   : > { %v3174_v30 = vpop.eup %2845  ;;  %1349 = vadd.xlane.f32.xlu0 %v1348_v29  ;;  %2716 = vmatprep.subr.bf16.mxu1 %v2908_v27 }
 0x28e   : > { %v1351_v31 = vsel %vm658_vm4, %v3174_v30, 0.0  ;;  %v3187_v36 = vpop.permute.xlu1 %1540 }
 0x28f   : > { %1352 = vadd.xlane.f32.xlu1 %v1351_v31 }
 0x292   : > { %v3189_v37 = vpop.permute.xlu1 %1605 }
 0x293   : > { %v3179_v32 = vpop.eup %2847 }
 0x294   : > { %v1354_v33 = vsel %vm658_vm4, %v3179_v32, 0.0 }
 0x295   : > { %v3183_v34 = vpop.eup %2849  ;;  %1355 = vadd.xlane.f32.xlu0 %v1354_v33 }
 0x296   : > { %v1357_v35 = vsel %vm658_vm4, %v3183_v34, 0.0  ;;  %v3193_v39 = vpop.permute.xlu1 %1735 }
 0x297   : > { %1358 = vadd.xlane.f32.xlu1 %v1357_v35 }
 0x30a   : > { %v1338_v40 = vpop.xlane.xlu0 %1337 }
 0x30b   : > { %2851 = vrcp.f32 %v1338_v40 }
 0x30e   : > { %v1341_v41 = vpop.xlane.xlu1 %1340 }
 0x30f   : > { %2853 = vrcp.f32 %v1341_v41 }
 0x312   : > { %v1344_v42 = vpop.xlane.xlu0 %1343 }
 0x313   : > { %2855 = vrcp.f32 %v1344_v42 }
 0x315   : > { %v2852_v43 = vpop.eup %2851 }
 0x316   : > { %v1347_v44 = vpop.xlane.xlu1 %1346  ;;  %v1368_v45 = vmul.f32 %v2852_v43, %v3154_v0 }
 0x317   : > { %2857 = vrcp.f32 %v1347_v44 }
 0x318   : > { %v1384_v46 = vpack.c.bf16 %v1368_v45, %v1368_v45  ;;  %v1930_v54 = vsel %vm658_vm4, %v1368_v45, 0.0 }
 0x319   : > { %v2854_v47 = vpop.eup %2853  ;;  %v1931_v58 = vrot.slane %v1930_v54, 4 }
 0x31a   : > { %1392 = vxpose.xlu0.c.b16.start.end [1/1] (short) (narrow) %v1384_v46, 16  ;;  %v1350_v48 = vpop.xlane.xlu0 %1349  ;;  %v1369_v49 = vmul.f32 %v2854_v47, %v2838_v6 }
 0x31b   : > { %2859 = vrcp.f32 %v1350_v48  ;;  %v1932_v1 = vadd.f32 %v1931_v58, %v1930_v54 }
 0x31c   : > { %v1353_v50 = vpop.xlane.xlu1 %1352  ;;  %v1385_v51 = vpack.c.bf16 %v1369_v49, %v1369_v49  ;;  %v1937_v52 = vsel %vm658_vm4, %v1369_v49, 0.0 }
 0x31d   : > { %v2856_v53 = vpop.eup %2855  ;;  %2861 = vrcp.f32 %v1353_v50  ;;  %v1938_v55 = vrot.slane %v1937_v52, 4  ;;  %v1933_v12 = vrot.slane %v1932_v1, 2 }
 0x31e   : > { %1458 = vxpose.xlu1.c.b16.start.end [1/1] (short) (narrow) %v1385_v51, 16  ;;  %v3199_v56 = vmul.f32 %v2856_v53, %v3159_v13 }
 0x31f   : > { %v1939_v61 = vadd.f32 %v1938_v55, %v1937_v52  ;;  %v1934_v21 = vadd.f32 %v1933_v12, %v1932_v1 }
 0x320   : > { %v1944_v59 = vsel %vm658_vm4, %v3199_v56, 0.0 }
 0x321   : > { %v2858_v57 = vpop.eup %2857  ;;  %v1945_v60 = vrot.slane %v1944_v59, 4  ;;  %v1940_v6 = vrot.slane %v1939_v61, 2  ;;  %v1935_v35 = vrot.slane %v1934_v21, 1 }
 0x322   : > { %v1356_v62 = vpop.xlane.xlu0 %1355  ;;  %1865 = vrot.lane.b32.xlu1 %v3124_v11, %s2910_s19  ;;  %v3206_v63 = vmul.f32 %v2858_v57, %v3163_v18 }
 0x323   : > { %2863 = vrcp.f32 %v1356_v62  ;;  %1800 = vrot.lane.b32.xlu0 %v3122_v10, %s2910_s19  ;;  %v1946_v0 = vadd.f32 %v1945_v60, %v1944_v59  ;;  %v1941_v16 = vadd.f32 %v1940_v6, %v1939_v61  ;;  %v1936_v50 = vadd.f32 %v1935_v35, %v1934_v21  ;;  %v1929_v6 = vld [vmem:[#allocation4] sm:$0xff] }
 0x324   : > { %v1359_v2 = vpop.xlane.xlu1 %1358  ;;  %v1951_v3 = vsel %vm658_vm4, %v3206_v63, 0.0 }
 0x325   : > { %v2860_v4 = vpop.eup %2859  ;;  %2865 = vrcp.f32 %v1359_v2  ;;  %v1952_v5 = vrot.slane %v1951_v3, 4  ;;  %v1947_v8 = vrot.slane %v1946_v0, 2 }
 0x326   : > { %v3213_v7 = vmul.f32 %v2860_v4, %v3168_v26  ;;  %v1942_v26 = vrot.slane %v1941_v16, 1 }
 0x327   : > { %v2862_v11 = vpop.eup %2861  ;;  %v1953_v9 = vadd.f32 %v1952_v5, %v1951_v3  ;;  %v1948_v18 = vadd.f32 %v1947_v8, %v1946_v0  ;;  %v2039_v8 = vlaneseq }
 0x328   : > { %v1958_v10 = vsel %vm658_vm4, %v3213_v7, 0.0  ;;  %v3218_v13 = vmul.f32 %v2862_v11, %v3174_v30  ;;  %v1943_v46 = vadd.f32 %v1942_v26, %v1941_v16  ;;  %v1387_v16 = vpack.c.bf16 %v3206_v63, %v3206_v63 }
 0x329   : > { %v1959_v14 = vrot.slane %v1958_v10, 4  ;;  %v1954_v15 = vrot.slane %v1953_v9, 2  ;;  %v1949_v30 = vrot.slane %v1948_v18, 1 }
 0x32a   : > { %v1965_v17 = vsel %vm658_vm4, %v3218_v13, 0.0  ;;  %v1995_v55 = vsel %vm1994_vm8, %v1943_v46, %v1936_v50  ;;  %v1676_v46 = vsel %vm1414_vm7, %v3191_v38, 0 }
 0x32b   : > { %v1960_v19 = vadd.f32 %v1959_v14, %v1958_v10  ;;  %v1966_v20 = vrot.slane %v1965_v17, 4  ;;  %v1955_v22 = vadd.f32 %v1954_v15, %v1953_v9  ;;  %v1386_v9 = vpack.c.bf16 %v3199_v56, %v3199_v56 }
 0x32c   : > { %v2040_v14 = vshrl.u32 %v2039_v8, 7  ;;  %v1388_v15 = vpack.c.bf16 %v3213_v7, %v3213_v7 }
 0x32d   : > { %v2864_v23 = vpop.eup %2863  ;;  %v1961_v24 = vrot.slane %v1960_v19, 2  ;;  %v1967_v25 = vadd.f32 %v1966_v20, %v1965_v17  ;;  %v1956_v40 = vrot.slane %v1955_v22, 1 }
 0x32e   : > { %v3223_v28 = vmul.f32 %v2864_v23, %v3179_v32  ;;  %v1950_v32 = vadd.f32 %v1949_v30, %v1948_v18  ;;  %v2048_v17 = vsub.s32 1, %v2040_v14  ;;  %v1389_v18 = vpack.c.bf16 %v3218_v13, %v3218_v13 }
 0x32f   : > { %v2866_v29 = vpop.eup %2865  ;;  %v1962_v31 = vadd.f32 %v1961_v24, %v1960_v19  ;;  %v1968_v33 = vrot.slane %v1967_v25, 2  ;;  %v1957_v51 = vadd.f32 %v1956_v40, %v1955_v22  ;;  %v2055_v22 = vsub.s32 2, %v2040_v14 }
 0x330   : > { %v1375_v41 = vmul.f32 %v2866_v29, %v3183_v34  ;;  %v1972_v42 = vsel %vm658_vm4, %v3223_v28, 0.0  ;;  %v1997_v58 = vsel %vm1996_vm9, %v1950_v32, %v1995_v55  ;;  %v1390_v21 = vpack.c.bf16 %v3223_v28, %v3223_v28  ;;  %v1376_v55 = vld [vmem:[#allocation3] sm:$0xff] }
 0x331   : > { %v1963_v43 = vrot.slane %v1962_v31, 1  ;;  %v1969_v44 = vadd.f32 %v1968_v33, %v1967_v25  ;;  %v1973_v45 = vrot.slane %v1972_v42, 4  ;;  %v1999_v60 = vsel %vm1998_vm10, %v1957_v51, %v1997_v58  ;;  %v2831_v51 = vld [vmem:[%s3376_s6] sm:$0xff]  }
 0x332   : > { %v1979_v47 = vsel %vm658_vm4, %v1375_v41, 0.0  ;;  %v1391_v19 = vpack.c.bf16 %v1375_v41, %v1375_v41  ;;  %v2062_v23 = vsub.s32 3, %v2040_v14  ;;  %v2041_v63 = vsub.s32 0, %v2040_v14 }
 0x333   : > { %v1980_v48 = vrot.slane %v1979_v47, 4  ;;  %v1974_v49 = vadd.f32 %v1973_v45, %v1972_v42  ;;  %v1970_v52 = vrot.slane %v1969_v44, 1  ;;  %v1964_v53 = vadd.f32 %v1963_v43, %v1962_v31 }
 0x334   : > { %v2076_v25 = vsub.s32 5, %v2040_v14  ;;  %v2069_v29 = vsub.s32 4, %v2040_v14  ;;  %v2090_v30 = vsub.s32 7, %v2040_v14  ;;  %v2083_v33 = vsub.s32 6, %v2040_v14 }
 0x335   : > { %v1981_v34 = vadd.f32 %v1980_v48, %v1979_v47  ;;  %v1975_v54 = vrot.slane %v1974_v49, 2  ;;  %v1971_v61 = vadd.f32 %v1970_v52, %v1969_v44  ;;  %v2001_v62 = vsel %vm2000_vm11, %v1964_v53, %v1999_v60  ;;  %v2832_v52 = vld [vmem:[%s3376_s6 + $0x8] sm:$0xff]  }
 0x336   : > { %v1546_v41 = vsel %vm1414_vm7, %v3187_v36, 0  ;;  %v1611_v43 = vsel %vm1414_vm7, %v3189_v37, 0  ;;  %v1741_v32 = vsel %vm1414_vm7, %v3193_v39, 0 }
 0x337   : > { %v1982_v59 = vrot.slane %v1981_v34, 2  ;;  %v1976_v57 = vadd.f32 %v1975_v54, %v1974_v49  ;;  %v2003_v4 = vsel %vm2002_vm12, %v1971_v61, %v2001_v62  ;;  %v1377_v61 = vld [vmem:[#allocation3 + $0x8] sm:$0xff] }
 0x339   : > { %v1983_v0 = vadd.f32 %v1982_v59, %v1981_v34  ;;  %v1977_v1 = vrot.slane %v1976_v57, 1 }
 0x33b   : > { %v1984_v2 = vrot.slane %v1983_v0, 1  ;;  %v1978_v3 = vadd.f32 %v1977_v1, %v1976_v57 }
 0x33d   : > { %v1985_v5 = vadd.f32 %v1984_v2, %v1983_v0  ;;  %v2005_v11 = vsel %vm2004_vm13, %v1978_v3, %v2003_v4 }
 0x33f   : > { %v2007_v12 = vsel %vm2006_vm14, %v1985_v5, %v2005_v11 }
 0x340   : > { %v2009_v10 = vadd.f32 %v2007_v12, %v1929_v6  ;;  %v3286_v6 = vld [vmem:[%s3015_s18] sm:$0xff]  }
 0x341   : > { %1523 = vxpose.xlu0.c.b16.start.end [1/1] (short) (narrow) %v1386_v9, 16  ;;  %v2526_v9 = vunpack.c.l.bf16 %v3286_v6  ;;  %v2527_v12 = vunpack.c.h.bf16 %v3286_v6 }
 0x342   : > { %2010 = vst.msk [vmem:[#allocation4] sm:$0xff] %vm658_vm4, %v2009_v10 }
 0x345   : > { %1653 = vxpose.xlu0.c.b16.start.end [1/1] (short) (narrow) %v1388_v15, 16  ;;  %1588 = vxpose.xlu1.c.b16.start.end [1/1] (short) (narrow) %v1387_v16, 16 }
 0x349   : > { %1718 = vxpose.xlu0.c.b16.start.end [1/1] (short) (narrow) %v1389_v18, 16  ;;  %1848 = vxpose.xlu1.c.b16.start.end [1/1] (short) (narrow) %v1391_v19, 16  ;;  %v2038_v56 = vld [vmem:[#allocation4] sm:$0xff] }
 0x34a   : > { %v2049_v20 = vrot.slane %v2038_v56, %v2048_v17  ;;  %v2056_v7 = vrot.slane %v2038_v56, %v2055_v22  ;;  %v2063_v24 = vrot.slane %v2038_v56, %v2062_v23  ;;  %v2042_v26 = vrot.slane %v2038_v56, %v2041_v63  ;;  %v1378_v22 = vld [vmem:[#allocation3 + $0x10] sm:$0xff] }
 0x34b   : > { %v2077_v13 = vrot.slane %v2038_v56, %v2076_v25  ;;  %v2070_v31 = vrot.slane %v2038_v56, %v2069_v29  ;;  %v2091_v28 = vrot.slane %v2038_v56, %v2090_v30  ;;  %v2084_v35 = vrot.slane %v2038_v56, %v2083_v33  ;;  %v1379_v25 = vld [vmem:[#allocation3 + $0x18] sm:$0xff] }
 0x34d   : > { %1783 = vxpose.xlu0.c.b16.start.end [1/1] (short) (narrow) %v1390_v21, 16  ;;  %2051 = vbcast.lane.b32.xlu1 %v2049_v20, 256 }
 0x351   : > { %2058 = vbcast.lane.b32.xlu1 %v2056_v7, 256 }
 0x355   : > { %2065 = vbcast.lane.b32.xlu1 %v2063_v24, 256 }
 0x356   : > { %2044 = vbcast.lane.b32.xlu0 %v2042_v26, 256 }
 0x359   : > { %2079 = vbcast.lane.b32.xlu1 %v2077_v13, 256 }
 0x35a   : > { %2072 = vbcast.lane.b32.xlu0 %v2070_v31, 256 }
 0x35d   : > { %2093 = vbcast.lane.b32.xlu1 %v2091_v28, 256 }
 0x35e   : > { %2086 = vbcast.lane.b32.xlu0 %v2084_v35, 256 }
 0x380   : > { %v1400_v40 = vpop.trf.xlu0 }
 0x381   : > { %2701 = vmatmul.mubr.msk.bf16.vlgmr.msra.gmra.mrb[24].mxu0 %vm658_vm4, %v1400_v40  ;;  %v1380_v40 = vld [vmem:[#allocation3 + $0x20] sm:$0xff] }
 0x382   : > { %2711 = vmatpush3.bf16.msra.mxu0 %v1546_v41  ;;  %2712 = vmatprep.mubr.msk.bf16.mxu0 %vm2909_vm5, %v2908_v27 }
 0x383   : > { %2722 = vmatprep.subr.bf16.mxu0 %v2908_v27 }
 0x384   : > { %v1466_v42 = vpop.trf.xlu1 }
 0x385   : > { %2707 = vmatmul.mubr.msk.bf16.vlgmr.msra.gmra.mrb[24].mxu1 %vm658_vm4, %v1466_v42 }
 0x386   : > { %2717 = vmatpush3.bf16.msra.mxu1 %v1611_v43  ;;  %2718 = vmatprep.mubr.msk.bf16.mxu1 %vm2909_vm5, %v2908_v27 }
 0x387   : > { %2728 = vmatprep.subr.bf16.mxu1 %v2908_v27 }
 0x394   : > { %v1866_v44 = vpop.permute.xlu1 %1865 }
 0x395   : > { %v1801_v36 = vpop.permute.xlu0 %1800  ;;  %v1871_v49 = vsel %vm1414_vm7, %v1866_v44, 0 }
 0x396   : > { %v1806_v48 = vsel %vm1414_vm7, %v1801_v36, 0 }
 0x3a7   : > { %v1531_v45 = vpop.trf.xlu0 }
 0x3a8   : > { %2713 = vmatmul.mubr.msk.bf16.vlgmr.msra.gmra.mrb[28].mxu0 %vm658_vm4, %v1531_v45 }
 0x3a9   : > { %2723 = vmatpush3.bf16.msra.mxu0 %v1676_v46  ;;  %2724 = vmatprep.mubr.msk.bf16.mxu0 %vm2909_vm5, %v2908_v27  ;;  %v1381_v46 = vld [vmem:[#allocation3 + $0x28] sm:$0xff] }
 0x3aa   : > { %2734 = vmatprep.subr.bf16.mxu0 %v2908_v27 }
 0x3ab   : > { %v1596_v37 = vpop.trf.xlu1  ;;  %v1661_v47 = vpop.trf.xlu0 }
 0x3ac   : > { %2719 = vmatmul.mubr.msk.bf16.vlgmr.msra.gmra.mrb[28].mxu1 %vm658_vm4, %v1596_v37 }
 0x3ad   : > { %2729 = vmatpush3.bf16.msra.mxu1 %v1741_v32  ;;  %2730 = vmatprep.mubr.msk.bf16.mxu1 %vm2909_vm5, %v2908_v27 }
 0x3ae   : > { %2740 = vmatprep.subr.bf16.mxu1 %v2908_v27 }
 0x3af   : > { %v1726_v38 = vpop.trf.xlu0  ;;  %v1856_v50 = vpop.trf.xlu1 }
 0x3b0   : > { %2725 = vmatmul.mubr.msk.bf16.vlgmr.msra.gmra.mrb[32].mxu0 %vm658_vm4, %v1661_v47  ;;  %v3298_v47 = vld [vmem:[%s3015_s18 + $0x8] sm:$0xff]  }
 0x3b1   : > { %2735 = vmatpush3.bf16.msra.mxu0 %v1806_v48  ;;  %2736 = vmatprep.mubr.msk.bf16.mxu0 %vm2909_vm5, %v2908_v27 }
 0x3b2   : > { %2746 = vmatprep.subr.bf16.mxu0 %v2831_v51 }
 0x3b3   : > { %v1791_v39 = vpop.trf.xlu0 }
 0x3b4   : > { %2731 = vmatmul.mubr.msk.bf16.vlgmr.msra.gmra.mrb[32].mxu1 %vm658_vm4, %v1726_v38 }
 0x3b5   : > { %2741 = vmatpush3.bf16.msra.mxu1 %v1871_v49  ;;  %2742 = vmatprep.mubr.msk.bf16.mxu1 %vm2909_vm5, %v2908_v27 }
 0x3b6   : > { %2758 = vmatprep.subr.bf16.mxu1 %v2908_v27 }
 0x3b8   : > { %2737 = vmatmul.mubr.msk.bf16.vlgmr.msra.gmra.mrb[36].mxu0 %vm658_vm4, %v1791_v39 }
 0x3b9   : > { %2747 = vmatpush3.bf16.msra.mxu0 %v2831_v51 }
 0x3ba   : > { %2748 = vmatprep.subr.bf16.mxu0 %v2832_v52 }
 0x3bc   : > { %2743 = vmatmul.mubr.msk.bf16.vlgmr.msra.gmra.mrb[36].mxu1 %vm658_vm4, %v1856_v50 }
 0x3bd   : > { %2762 = vmatprep.mubr.msk.bf16.mxu1 %vm2909_vm5, %v2908_v27  ;;  %2749 = vmatpush3.bf16.msra.mxu0 %v2832_v52 }
 0x3bf   : > { %v2052_v34 = vpop.permute.xlu1 %2051 }
 0x3c0   : > { %v2096_v58 = vadd.f32 1e-09, %v2052_v34  ;;  %v2531_v34 = vunpack.c.h.bf16 %v3298_v47 }
 0x3c3   : > { %v2059_v56 = vpop.permute.xlu1 %2058 }
 0x3c4   : > { %v2097_v21 = vadd.f32 1e-09, %v2059_v56 }
 0x3c7   : > { %v2066_v20 = vpop.permute.xlu1 %2065 }
 0x3c8   : > { %v2045_v53 = vpop.permute.xlu0 %2044  ;;  %v2098_v7 = vadd.f32 1e-09, %v2066_v20 }
 0x3c9   : > { %v2095_v54 = vadd.f32 1e-09, %v2045_v53  ;;  %v2530_v53 = vunpack.c.l.bf16 %v3298_v47 }
 0x3cb   : > { %2867 = vrcp.f32 %v2095_v54  ;;  %v2080_v31 = vpop.permute.xlu1 %2079 }
 0x3cc   : > { %2869 = vrcp.f32 %v2096_v58  ;;  %v2073_v29 = vpop.permute.xlu0 %2072  ;;  %v2100_v43 = vadd.f32 1e-09, %v2080_v31 }
 0x3cd   : > { %2871 = vrcp.f32 %v2097_v21  ;;  %v2099_v35 = vadd.f32 1e-09, %v2073_v29 }
 0x3ce   : > { %2873 = vrcp.f32 %v2098_v7 }
 0x3cf   : > { %2875 = vrcp.f32 %v2099_v35  ;;  %v2094_v50 = vpop.permute.xlu1 %2093 }
 0x3d0   : > { %v2087_v38 = vpop.permute.xlu0 %2086  ;;  %2877 = vrcp.f32 %v2100_v43 }
 0x3d1   : > { %v2101_v58 = vadd.f32 1e-09, %v2087_v38 }
 0x3d3   : > { %2879 = vrcp.f32 %v2101_v58 }
 0x3d5   : > { %v2868_v8 = vpop.eup %2867 }
 0x3d6   : > { %v2870_v14 = vpop.eup %2869 }
 0x3d7   : > { %v2872_v49 = vpop.eup %2871 }
 0x454   : > { %v1452_v59 = vpop.f32.mrb[24].mxu0 }
 0x455   : > { %v1913_v57 = vadd.f32 %v1452_v59, %v1376_v55  ;;  %v2702_v60 = vpop.f32.mrb[25].mxu0  ;;  %v2874_v55 = vpop.eup %2873  ;;  %v1382_v59 = vld [vmem:[#allocation3 + $0x30] sm:$0xff] }
 0x456   : > { %v1455_v62 = vpop.f32.mrb[26].mxu0 }
 0x457   : > { %1921 = vst.msk [vmem:[#allocation3] sm:$0xff] %vm555_vm3, %v1913_v57  ;;  %v2703_v0 = vpop.f32.mrb[27].mxu0 }
 0x458   : > { %v1517_v1 = vpop.f32.mrb[24].mxu1  ;;  %v2102_v0 = vadd.f32 1e-09, %v2094_v50 }
 0x459   : > { %v1914_v2 = vadd.f32 %v1517_v1, %v1377_v61  ;;  %v2708_v3 = vpop.f32.mrb[25].mxu1 }
 0x45a   : > { %v1520_v4 = vpop.f32.mrb[26].mxu1  ;;  %2881 = vrcp.f32 %v2102_v0 }
 0x45b   : > { %1922 = vst.msk [vmem:[#allocation3 + $0x8] sm:$0xff] %vm555_vm3, %v1914_v2  ;;  %v2709_v5 = vpop.f32.mrb[27].mxu1 }
 0x45e   : > { %v2030_v11 = vld [vmem:[#allocation3] sm:$0xff] }
 0x45f   : > { %v2104_v10 = vmul.f32 %v2868_v8, %v2030_v11  ;;  %v1383_v11 = vld [vmem:[#allocation3 + $0x38] sm:$0xff] }
 0x461   : > { %v2119_v17 = vsub.f32 %v2526_v9, %v2104_v10  ;;  %v3309_v10 = vld [vmem:[%s3015_s18 + $0x10] sm:$0xff]  }
 0x462   : > { %v2031_v15 = vld [vmem:[#allocation3 + $0x8] sm:$0xff]  ;;  %v2534_v20 = vunpack.c.l.bf16 %v3309_v10  ;;  %v2535_v21 = vunpack.c.h.bf16 %v3309_v10  ;;  %v2515_v10 = vld [vmem:[%s3379_s9] ss:$0 sm:$0xff] }
 0x463   : > { %v2106_v16 = vmul.f32 %v2870_v14, %v2031_v15 }
 0x465   : > { %v2120_v18 = vsub.f32 %v2527_v12, %v2106_v16 }
 0x467   : > { %v2127_v19 = vpack.c.bf16 %v2120_v18, %v2119_v17  ;;  %v2876_v17 = vpop.eup %2875 }
 0x468   : > { %v2878_v7 = vpop.eup %2877 }
 0x469   : > { %2750 = vmatprep.mubr.msk.bf16.mxu0 %vm555_vm3, %v2127_v19 }
 0x47b   : > { %v1582_v23 = vpop.f32.mrb[28].mxu0 }
 0x47c   : > { %v1915_v63 = vadd.f32 %v1582_v23, %v1378_v22  ;;  %v2714_v24 = vpop.f32.mrb[29].mxu0 }
 0x47d   : > { %v1585_v26 = vpop.f32.mrb[30].mxu0 }
 0x47e   : > { %1923 = vst.msk [vmem:[#allocation3 + $0x10] sm:$0xff] %vm555_vm3, %v1915_v63  ;;  %v2715_v13 = vpop.f32.mrb[31].mxu0 }
 0x47f   : > { %v1647_v30 = vpop.f32.mrb[28].mxu1  ;;  %v2542_v13 = vld [vmem:[%s3015_s18 + $0x18] sm:$0xff]   ;;  %s391_s18 = scalar_lea.vmem %s3380_s10, %s2993_s23 }
 0x480   : > { %v1916_v33 = vadd.f32 %v1647_v30, %v1379_v25  ;;  %v2720_v28 = vpop.f32.mrb[29].mxu1  ;;  %v2539_v35 = vunpack.c.h.bf16 %v2542_v13 }
 0x481   : > { %v1650_v41 = vpop.f32.mrb[30].mxu1  ;;  %v2538_v28 = vunpack.c.l.bf16 %v2542_v13 }
 0x482   : > { %1924 = vst.msk [vmem:[#allocation3 + $0x18] sm:$0xff] %vm555_vm3, %v1916_v33  ;;  %v2721_v42 = vpop.f32.mrb[31].mxu1  ;;  %v2880_v33 = vpop.eup %2879 }
 0x483   : > { %v1712_v36 = vpop.f32.mrb[32].mxu0  ;;  %v2882_v41 = vpop.eup %2881 }
 0x484   : > { %v1917_v44 = vadd.f32 %v1712_v36, %v1380_v40  ;;  %v2726_v45 = vpop.f32.mrb[33].mxu0 }
 0x485   : > { %v1715_v37 = vpop.f32.mrb[34].mxu0  ;;  %v2032_v32 = vld [vmem:[#allocation3 + $0x10] sm:$0xff] }
 0x486   : > { %1925 = vst.msk [vmem:[#allocation3 + $0x20] sm:$0xff] %vm555_vm3, %v1917_v44  ;;  %v2727_v48 = vpop.f32.mrb[35].mxu0  ;;  %v2108_v54 = vmul.f32 %v2872_v49, %v2032_v32  ;;  %v2834_v37 = vld [vmem:[%s3378_s8 + $0x8] sm:$0xff]  }
 0x487   : > { %v1777_v39 = vpop.f32.mrb[32].mxu1 }
 0x488   : > { %v1918_v51 = vadd.f32 %v1777_v39, %v1381_v46  ;;  %v2732_v52 = vpop.f32.mrb[33].mxu1  ;;  %v2121_v3 = vsub.f32 %v2530_v53, %v2108_v54  ;;  %v2833_v46 = vld [vmem:[%s3378_s8] sm:$0xff]  }
 0x489   : > { %v1780_v57 = vpop.f32.mrb[34].mxu1  ;;  %v2033_v60 = vld [vmem:[#allocation3 + $0x18] sm:$0xff]  ;;  %2759 = vmatpush3.bf16.msra.mxu1 %v2833_v46  ;;  %v2508_v39 = vld [vmem:[%s3377_s7] ss:$0 sm:$0xff] }
 0x48a   : > { %1926 = vst.msk [vmem:[#allocation3 + $0x28] sm:$0xff] %vm555_vm3, %v1918_v51  ;;  %v2733_v61 = vpop.f32.mrb[35].mxu1  ;;  %v2110_v62 = vmul.f32 %v2874_v55, %v2033_v60  ;;  %2760 = vmatprep.subr.bf16.mxu1 %v2908_v27 }
 0x48b   : > { %v1842_v1 = vpop.f32.mrb[36].mxu0 }
 0x48c   : > { %v1919_v2 = vadd.f32 %v1842_v1, %v1382_v59  ;;  %v2122_v4 = vsub.f32 %v2531_v34, %v2110_v62  ;;  %v2738_v5 = vpop.f32.mrb[37].mxu0 }
 0x48d   : > { %v1845_v8 = vpop.f32.mrb[38].mxu0  ;;  %v2034_v14 = vld [vmem:[#allocation3 + $0x20] sm:$0xff]  ;;  %2761 = vmatpush3.bf16.msra.mxu1 %v2834_v37 }
 0x48e   : > { %1927 = vst.msk [vmem:[#allocation3 + $0x30] sm:$0xff] %vm555_vm3, %v1919_v2  ;;  %v2128_v15 = vpack.c.bf16 %v2122_v4, %v2121_v3  ;;  %v2739_v16 = vpop.f32.mrb[39].mxu0  ;;  %v2112_v22 = vmul.f32 %v2876_v17, %v2034_v14 }
 0x48f   : > { %v1907_v18 = vpop.f32.mrb[36].mxu1 }
 0x490   : > { %v1920_v19 = vadd.f32 %v1907_v18, %v1383_v11  ;;  %2751 = vmatmul.mubr.msk.bf16.vlgmr.msra.gmra.mrb[40].mxu0 %vm555_vm3, %v2128_v15  ;;  %v2744_v56 = vpop.f32.mrb[37].mxu1  ;;  %v2123_v26 = vsub.f32 %v2534_v20, %v2112_v22 }
 0x491   : > { %v1910_v23 = vpop.f32.mrb[38].mxu1  ;;  %v2035_v63 = vld [vmem:[#allocation3 + $0x28] sm:$0xff] }
 0x492   : > { %1928 = vst.msk [vmem:[#allocation3 + $0x38] sm:$0xff] %vm555_vm3, %v1920_v19  ;;  %v2745_v24 = vpop.f32.mrb[39].mxu1  ;;  %v2114_v25 = vmul.f32 %v2878_v7, %v2035_v63 }
 0x494   : > { %v2124_v29 = vsub.f32 %v2535_v21, %v2114_v25 }
 0x495   : > { %v2036_v30 = vld [vmem:[#allocation3 + $0x30] sm:$0xff] }
 0x496   : > { %v2129_v31 = vpack.c.bf16 %v2124_v29, %v2123_v26  ;;  %v2116_v40 = vmul.f32 %v2880_v33, %v2036_v30 }
 0x498   : > { %2754 = vmatprep.mubr.msk.bf16.mxu0 %vm555_vm3, %v2129_v31  ;;  %v2125_v36 = vsub.f32 %v2538_v28, %v2116_v40 }
 0x499   : > { %v2037_v42 = vld [vmem:[#allocation3 + $0x38] sm:$0xff] }
 0x49a   : > { %v2118_v43 = vmul.f32 %v2882_v41, %v2037_v42 }
 0x49c   : > { %v2126_v44 = vsub.f32 %v2539_v35, %v2118_v43 }
 0x49e   : > { %v2130_v45 = vpack.c.bf16 %v2126_v44, %v2125_v36 }
 0x4a0   : > { %2755 = vmatmul.mubr.msk.bf16.gmra.mrb[44].mxu0 %vm555_vm3, %v2130_v45 }
 0x563   : > { %v2752_v32 = vpop.f32.mrb[40].mxu0 }
 0x564   : > { %v2200_v38 = vpop.f32.mrb[41].mxu0  ;;  %v2209_v50 = vadd.f32 %v2752_v32, %v2508_v39 }
 0x565   : > { %v2753_v48 = vpop.f32.mrb[42].mxu0  ;;  %v2201_v51 = vadd.f32 %v2508_v39, %v2200_v38 }
 0x566   : > { %v2203_v49 = vpop.f32.mrb[43].mxu0  ;;  %v2212_v52 = vadd.f32 %v2753_v48, %v2508_v39  ;;  %v2233_v55 = vmax.f32 %v2209_v50, 0.0 }
 0x567   : > { %v2204_v54 = vadd.f32 %v2508_v39, %v2203_v49  ;;  %v2231_v58 = vmax.f32 %v2201_v51, 0.0 }
 0x568   : > { %v2234_v59 = vmax.f32 %v2212_v52, 0.0  ;;  %v2241_v1 = vadd.f32 %v2530_v53, %v2233_v55 }
 0x569   : > { %v2232_v61 = vmax.f32 %v2204_v54, 0.0  ;;  %v2239_v5 = vadd.f32 %v2526_v9, %v2231_v58 }
 0x56a   : > { %v2242_v14 = vadd.f32 %v2531_v34, %v2234_v59  ;;  %v2249_v53 = vsel %vm555_vm3, %v2241_v1, -inf }
 0x56b   : > { %v2240_v17 = vadd.f32 %v2527_v12, %v2232_v61  ;;  %v2247_v7 = vsel %vm555_vm3, %v2239_v5, -inf }
 0x56c   : > { %v2250_v34 = vsel %vm555_vm3, %v2242_v14, -inf }
 0x56d   : > { %v2248_v12 = vsel %vm555_vm3, %v2240_v17, -inf }
 0x573   : > { %v2756_v27 = vpop.f32.mrb[44].mxu0 }
 0x574   : > { %v2225_v57 = vadd.f32 %v2756_v27, %v2508_v39  ;;  %v2216_v60 = vpop.f32.mrb[45].mxu0 }
 0x575   : > { %v2217_v62 = vadd.f32 %v2508_v39, %v2216_v60  ;;  %v2757_v0 = vpop.f32.mrb[46].mxu0 }
 0x576   : > { %v2237_v2 = vmax.f32 %v2225_v57, 0.0  ;;  %v2228_v3 = vadd.f32 %v2757_v0, %v2508_v39  ;;  %v2219_v4 = vpop.f32.mrb[47].mxu0 }
 0x577   : > { %v2235_v11 = vmax.f32 %v2217_v62, 0.0  ;;  %v2220_v8 = vadd.f32 %v2508_v39, %v2219_v4 }
 0x578   : > { %v2245_v15 = vadd.f32 %v2538_v28, %v2237_v2  ;;  %v2238_v16 = vmax.f32 %v2228_v3, 0.0 }
 0x579   : > { %v2243_v18 = vadd.f32 %v2534_v20, %v2235_v11  ;;  %v2236_v19 = vmax.f32 %v2220_v8, 0.0 }
 0x57a   : > { %v2255_v56 = vsel %vm555_vm3, %v2245_v15, -inf  ;;  %v2246_v22 = vadd.f32 %v2539_v35, %v2238_v16 }
 0x57b   : > { %v2256_v9 = vmax.f32 %v2249_v53, %v2255_v56  ;;  %v2251_v23 = vsel %vm555_vm3, %v2243_v18, -inf  ;;  %v2244_v47 = vadd.f32 %v2535_v21, %v2236_v19 }
 0x57c   : > { %v2252_v63 = vmax.f32 %v2247_v7, %v2251_v23  ;;  %v2257_v6 = vsel %vm555_vm3, %v2246_v22, -inf }
 0x57d   : > { %v2258_v20 = vmax.f32 %v2250_v34, %v2257_v6  ;;  %v2253_v24 = vsel %vm555_vm3, %v2244_v47, -inf }
 0x57e   : > { %v2254_v25 = vmax.f32 %v2248_v12, %v2253_v24 }
 0x57f   : > { %v2260_v26 = vmax.f32 %v2256_v9, %v2258_v20 }
 0x580   : > { %v2259_v29 = vmax.f32 %v2252_v63, %v2254_v25 }
 0x582   : > { %v2261_v13 = vmax.f32 %v2259_v29, %v2260_v26 }
 0x584   : > { %v2262_v30 = vpack.c.bf16 %v2261_v13, %v2261_v13 }
 0x586   : > { %2763 = vmatmul.mubr.msk.bf16.vlgmr.msra.gmra.mrb[40].mxu1 %vm555_vm3, %v2262_v30 }
 0x659   : > { %v2323_v21 = vpop.f32.mrb[40].mxu1 }
 0x65a   : > { %v2324_v31 = vadd.f32 %v2515_v10, %v2323_v21  ;;  %v2764_v33 = vpop.f32.mrb[41].mxu1 }
 0x65b   : > { %v2326_v28 = vpop.f32.mrb[42].mxu1 }
 0x65c   : > { %v2329_v35 = vmax.f32 %v2324_v31, 0.0  ;;  %v2765_v40 = vpop.f32.mrb[43].mxu1 }
 0x65e   : > { %2330 = vxpose.xlu0.b32.start.end [1/1] (short) (narrow) %v2329_v35, 32 }
 0x6de   : > { %v2346_v41 = vpop.trf.xlu0 }
 0x6df   : > { %2362 = vst.msk [vmem:[%s391_s18] sm:$0xff] %vm658_vm4, %v2346_v41 }
 0x6e2   : > { %v2347_v42 = vpop.trf.xlu0 }
 0x6e3   : > { %2363 = vst.msk [vmem:[%s391_s18 + $0x8] sm:$0xff] %vm658_vm4, %v2347_v42 }
 0x6e6   : > { %v2348_v43 = vpop.trf.xlu0 }
 0x6e7   : > { %2364 = vst.msk [vmem:[%s391_s18 + $0x10] sm:$0xff] %vm658_vm4, %v2348_v43 }
 0x6ea   : > { %v2349_v36 = vpop.trf.xlu0 }
 0x6eb   : > { %2365 = vst.msk [vmem:[%s391_s18 + $0x18] sm:$0xff] %vm658_vm4, %v2349_v36 }
 0x6ec PF: > { %s20_s15 = sadd.s32 1, %s2905_s15   ;;  %s3381_s13 = smov %s2901_s14 }
 0x6ed   : > { %p17_p5 = scmp.ge.s32.totalorder %s20_s15, 4   ;;  %s3382_s14 = smov %s3384_s16 }
 0x6ef   :  { %19 = sbr.rel (!%p17_p5) target bundleno = 2 (0x2), region = 103 }

</bundles_post_ra>
